<compile_context>
chip_gen: v5e
topology: v5e:2x2
jax: 0.10.0
libtpu: 0.0.40
codegen_flags: <defaults>
</compile_context>

<pallas_src>
import functools

import jax
import jax.numpy as jnp
from jax import lax
from jax.experimental import pallas as pl
from jax.experimental.pallas import tpu as pltpu


# ------------------------------- Pallas kernel --------------------------------
def _layer_norm_f32(x, gamma, beta, eps):
    mu = jnp.mean(x, axis=-1, keepdims=True)
    d = x - mu
    var = jnp.mean(d * d, axis=-1, keepdims=True)
    return d * lax.rsqrt(var + eps) * gamma + beta


def _encoder_block_kernel(vl_ref,                                   # SMEM (B,)
                          x_ref, wqkv_ref, bqkv_ref,
                          wo_ref, bo_ref, ln1g_ref, ln1b_ref,
                          w1_ref, b1_ref, w2_ref, b2_ref,
                          ln2g_ref, ln2b_ref,
                          o_ref, *, num_heads, eps):
    """One full transformer encoder block for one batch element, all in VMEM."""
    S, H = x_ref.shape
    Dh = H // num_heads
    scale = 1.0 / (float(Dh) ** 0.5)

    x = x_ref[...]                          # (S, H) f32 residual kept in f32
    xb = x.astype(jnp.bfloat16)

    # 1) fused QKV projection: one bf16 MXU matmul for q, k and v together.
    qkv = jnp.dot(xb, wqkv_ref[...],
                  preferred_element_type=jnp.float32) + bqkv_ref[...]  # (S, 3H)

    # 2) masked multi-head attention (per-head micro-matmuls, static unroll).
    vl = vl_ref[pl.program_id(0)]           # scalar int32 valid key length
    key_idx = lax.broadcasted_iota(jnp.int32, (S, S), 1)
    mask = key_idx < vl
    ctx_heads = []
    for h in range(num_heads):
        q_h = qkv[:, h * Dh:(h + 1) * Dh].astype(jnp.bfloat16)
        k_h = qkv[:, H + h * Dh:H + (h + 1) * Dh].astype(jnp.bfloat16)
        v_h = qkv[:, 2 * H + h * Dh:2 * H + (h + 1) * Dh].astype(jnp.bfloat16)
        scores = lax.dot_general(q_h, k_h, (((1,), (1,)), ((), ())),
                                 preferred_element_type=jnp.float32) * scale
        scores = jnp.where(mask, scores, -1e6)
        m = jnp.max(scores, axis=-1, keepdims=True)
        p = jnp.exp(scores - m)
        inv = pl.reciprocal(jnp.sum(p, axis=-1, keepdims=True), approx=True)
        attn = (p * inv).astype(jnp.bfloat16)
        ctx_heads.append(jnp.dot(attn, v_h,
                                 preferred_element_type=jnp.float32))
    # merge heads along the feature axis -> lane-dense (S, H) slab.
    ctx = jnp.concatenate(ctx_heads, axis=-1)

    # 3) output projection + residual + LayerNorm (f32 statistics).
    y = jnp.dot(ctx.astype(jnp.bfloat16), wo_ref[...],
                preferred_element_type=jnp.float32) + bo_ref[...] + x
    y = _layer_norm_f32(y, ln1g_ref[...], ln1b_ref[...], eps)

    # 4) position-wise FFN + residual + LayerNorm.
    h1 = jnp.dot(y.astype(jnp.bfloat16), w1_ref[...],
                 preferred_element_type=jnp.float32) + b1_ref[...]
    h1 = jnp.maximum(h1, 0.0)
    z = jnp.dot(h1.astype(jnp.bfloat16), w2_ref[...],
                preferred_element_type=jnp.float32) + b2_ref[...] + y
    z = _layer_norm_f32(z, ln2g_ref[...], ln2b_ref[...], eps)

    o_ref[...] = z.astype(o_ref.dtype)


# ------------------------------- wrapper --------------------------------------
def encoder_block_fused(X, valid_lens, bp, *, num_heads, eps=1e-5):
    """X: (B, S, H) f32; valid_lens: (B,) int; bp: pre-packed block params."""
    B, S, H = X.shape
    F = bp["w1"].shape[1]
    X2 = X.reshape(B * S, H)

    kernel = functools.partial(_encoder_block_kernel,
                               num_heads=num_heads, eps=eps)

    def rows(b, vl):                 # activation rows of batch b
        return (b, 0)

    def whole(b, vl):                # weights: same block every step (resident)
        return (0, 0)

    out = pl.pallas_call(
        kernel,
        out_shape=jax.ShapeDtypeStruct((B * S, H), jnp.float32),
        grid_spec=pltpu.PrefetchScalarGridSpec(
            num_scalar_prefetch=1,               # valid_lens -> SMEM
            grid=(B,),
            in_specs=[
                pl.BlockSpec((S, H), rows),          # X rows of this batch
                pl.BlockSpec((H, 3 * H), whole),     # W_qkv (bf16)
                pl.BlockSpec((1, 3 * H), whole),     # b_qkv
                pl.BlockSpec((H, H), whole),         # W_o   (bf16)
                pl.BlockSpec((1, H), whole),         # b_o
                pl.BlockSpec((1, H), whole),         # ln1 gamma
                pl.BlockSpec((1, H), whole),         # ln1 beta
                pl.BlockSpec((H, F), whole),         # W1    (bf16)
                pl.BlockSpec((1, F), whole),         # b1
                pl.BlockSpec((F, H), whole),         # W2    (bf16)
                pl.BlockSpec((1, H), whole),         # b2
                pl.BlockSpec((1, H), whole),         # ln2 gamma
                pl.BlockSpec((1, H), whole),         # ln2 beta
            ],
            out_specs=pl.BlockSpec((S, H), rows),
        ),
        compiler_params=pltpu.CompilerParams(
            dimension_semantics=("parallel",)),      # batches -> both TCs on v7x
    )(valid_lens.astype(jnp.int32), X2,
      bp["w_qkv"], bp["b_qkv"], bp["w_o"], bp["b_o"],
      bp["ln1_g"], bp["ln1_b"], bp["w1"], bp["b1"],
      bp["w2"], bp["b2"], bp["ln2_g"], bp["ln2_b"])
    return out.reshape(B, S, H)
    # TODO(synk): at production BERT sizes (H=768, S=512, B>=32) tile the row
    # axis (>=512-row blocks) instead of whole-sequence blocks and raise
    # vmem_limit_bytes; at these toy shapes everything fits VMEM trivially.


def bert_encoder_forward(tokens, segments, valid_lens, packed, *, num_heads):
    """tokens/segments: (B, S) int32; valid_lens: (B,) int32."""
    S = tokens.shape[1]
    # Embedding gathers + positional add are pure layout/gather glue (XLA).
    X = (jnp.take(packed["tok_emb"], tokens, axis=0)
         + jnp.take(packed["seg_emb"], segments, axis=0)
         + packed["pos_emb"][:, :S, :])
    for bp in packed["blocks"]:
        X = encoder_block_fused(X, valid_lens, bp, num_heads=num_heads)
    # TODO(synk): dropout is treated as identity (eval mode / p=0).
    return X


# ------------------------------- params ---------------------------------------
def init_params(key, vocab_size, num_hiddens, ffn_num_hiddens, num_layers,
                max_len):
    keys = jax.random.split(key, 3 + num_layers)
    params = {
        "tok_emb": jax.random.normal(keys[0], (vocab_size, num_hiddens),
                                     dtype=jnp.float32),
        "seg_emb": jax.random.normal(keys[1], (2, num_hiddens),
                                     dtype=jnp.float32),
        "pos_emb": jax.random.normal(keys[2], (1, max_len, num_hiddens),
                                     dtype=jnp.float32),
        "blocks": [],
    }

    def lin_init(kw, kb, out_dim, in_dim):
        s = 1.0 / jnp.sqrt(jnp.float32(in_dim))
        w = jax.random.uniform(kw, (out_dim, in_dim), minval=-s, maxval=s,
                               dtype=jnp.float32)
        b = jax.random.uniform(kb, (out_dim,), minval=-s, maxval=s,
                               dtype=jnp.float32)
        return w, b

    for layer in range(num_layers):
        k = jax.random.split(keys[3 + layer], 16)
        W_q, b_q = lin_init(k[0], k[1], num_hiddens, num_hiddens)
        W_k, b_k = lin_init(k[2], k[3], num_hiddens, num_hiddens)
        W_v, b_v = lin_init(k[4], k[5], num_hiddens, num_hiddens)
        W_o, b_o = lin_init(k[6], k[7], num_hiddens, num_hiddens)
        W1, b1 = lin_init(k[8], k[9], ffn_num_hiddens, num_hiddens)
        W2, b2 = lin_init(k[10], k[11], num_hiddens, ffn_num_hiddens)
        params["blocks"].append({
            "W_q": W_q, "b_q": b_q, "W_k": W_k, "b_k": b_k,
            "W_v": W_v, "b_v": b_v, "W_o": W_o, "b_o": b_o,
            "W1": W1, "b1": b1, "W2": W2, "b2": b2,
            "ln1_g": 1.0 + 0.1 * jax.random.normal(k[12], (num_hiddens,)),
            "ln1_b": 0.1 * jax.random.normal(k[13], (num_hiddens,)),
            "ln2_g": 1.0 + 0.1 * jax.random.normal(k[14], (num_hiddens,)),
            "ln2_b": 0.1 * jax.random.normal(k[15], (num_hiddens,)),
        })
    return params


def pack_params(params):
    """One-time weight prep: fuse/transpose/cast so the forward path is clean."""
    packed = {"tok_emb": params["tok_emb"], "seg_emb": params["seg_emb"],
              "pos_emb": params["pos_emb"], "blocks": []}
    for p in params["blocks"]:
        row = lambda v: v.reshape(1, -1).astype(jnp.float32)
        packed["blocks"].append({
            "w_qkv": jnp.concatenate([p["W_q"], p["W_k"], p["W_v"]],
                                     axis=0).T.astype(jnp.bfloat16),
            "b_qkv": row(jnp.concatenate([p["b_q"], p["b_k"], p["b_v"]])),
            "w_o": p["W_o"].T.astype(jnp.bfloat16), "b_o": row(p["b_o"]),
            "w1": p["W1"].T.astype(jnp.bfloat16), "b1": row(p["b1"]),
            "w2": p["W2"].T.astype(jnp.bfloat16), "b2": row(p["b2"]),
            "ln1_g": row(p["ln1_g"]), "ln1_b": row(p["ln1_b"]),
            "ln2_g": row(p["ln2_g"]), "ln2_b": row(p["ln2_b"]),
        })
    return packed


# ------------------------- pure-JAX reference (check) --------------------------
def _split_heads(x, num_heads):          # transpose_qkv
    B, S, H = x.shape
    x = x.reshape(B, S, num_heads, H // num_heads)
    x = jnp.transpose(x, (0, 2, 1, 3))
    return x.reshape(B * num_heads, S, H // num_heads)


def _merge_heads(x, num_heads):          # transpose_output
    BH, S, d = x.shape
    B = BH // num_heads
    x = x.reshape(B, num_heads, S, d)
    x = jnp.transpose(x, (0, 2, 1, 3))
    return x.reshape(B, S, num_heads * d)


def _layer_norm_ref(x, gamma, beta, eps=1e-5):
    mu = jnp.mean(x, axis=-1, keepdims=True)
    var = jnp.mean((x - mu) ** 2, axis=-1, keepdims=True)
    return (x - mu) * lax.rsqrt(var + eps) * gamma + beta


def _encoder_block_ref(X, valid_lens, p, num_heads):
    B, S, H = X.shape

    def lin(x, w, b):
        return x @ w.T + b

    q = _split_heads(lin(X, p["W_q"], p["b_q"]), num_heads)
    k = _split_heads(lin(X, p["W_k"], p["b_k"]), num_heads)
    v = _split_heads(lin(X, p["W_v"], p["b_v"]), num_heads)
    d = q.shape[-1]
    scores = jnp.einsum("bqd,bkd->bqk", q, k) / jnp.sqrt(jnp.float32(d))
    vl = jnp.repeat(valid_lens.astype(jnp.int32), num_heads)
    mask = jnp.arange(S)[None, None, :] < vl[:, None, None]
    scores = jnp.where(mask, scores, -1e6)
    attn = jax.nn.softmax(scores, axis=-1)
    ctx = _merge_heads(jnp.einsum("bqk,bkd->bqd", attn, v), num_heads)
    Y = _layer_norm_ref(lin(ctx, p["W_o"], p["b_o"]) + X,
                        p["ln1_g"], p["ln1_b"])
    f = lin(jax.nn.relu(lin(Y, p["W1"], p["b1"])), p["W2"], p["b2"])
    return _layer_norm_ref(f + Y, p["ln2_g"], p["ln2_b"])


def _forward_ref(tokens, segments, valid_lens, params, num_heads):
    S = tokens.shape[1]
    X = (jnp.take(params["tok_emb"], tokens, axis=0)
         + jnp.take(params["seg_emb"], segments, axis=0)
         + params["pos_emb"][:, :S, :])
    for p in params["blocks"]:
        X = _encoder_block_ref(X, valid_lens, p, num_heads)
    return X


# ----------------------------------- main --------------------------------------
if __name__ == "__main__":
    vocab_size = 100
    num_hiddens = 128          # lane-dense hidden size (multiple of 128)
    ffn_num_hiddens = 256
    num_heads = 4
    num_layers = 2
    max_len = 64
    batch, seq_len = 2, 8

    key = jax.random.PRNGKey(0)
    pkey, tkey, skey = jax.random.split(key, 3)
    params = init_params(pkey, vocab_size, num_hiddens, ffn_num_hiddens,
                         num_layers, max_len)
    packed = pack_params(params)       # hoisted weight prep (once, outside jit)

    tokens = jax.random.randint(tkey, (batch, seq_len), 0, vocab_size,
                                dtype=jnp.int32)
    segments = jax.random.randint(skey, (batch, seq_len), 0, 2,
                                  dtype=jnp.int32)
    valid_lens = jnp.array([seq_len, 5], dtype=jnp.int32)

    fwd = jax.jit(functools.partial(bert_encoder_forward, num_heads=num_heads))
    out = fwd(tokens, segments, valid_lens, packed)
    out = jax.block_until_ready(out)

    assert out.shape == (batch, seq_len, num_hiddens)

    ref = _forward_ref(tokens, segments, valid_lens, params, num_heads)
    max_err = float(jnp.max(jnp.abs(out - ref)))
    # bf16 matmul operands (f32 accumulation / f32 LN & softmax stats) leave a
    # small numerical delta vs. the pure-f32 reference.
    assert jnp.allclose(out, ref, atol=3e-2, rtol=3e-2), max_err

    print("KERNEL_OK")
</pallas_src>

<mosaic_0001>
module attributes {stable_mosaic.version = 11 : i64} {
  func.func @_encoder_block_kernel(%arg0: i32, %arg1: memref<2xi32, #tpu.memory_space<smem>>, %arg2: memref<8x128xf32, #tpu.memory_space<vmem>>, %arg3: memref<128x384xbf16, #tpu.memory_space<vmem>>, %arg4: memref<1x384xf32, #tpu.memory_space<vmem>>, %arg5: memref<128x128xbf16, #tpu.memory_space<vmem>>, %arg6: memref<1x128xf32, #tpu.memory_space<vmem>>, %arg7: memref<1x128xf32, #tpu.memory_space<vmem>>, %arg8: memref<1x128xf32, #tpu.memory_space<vmem>>, %arg9: memref<128x256xbf16, #tpu.memory_space<vmem>>, %arg10: memref<1x256xf32, #tpu.memory_space<vmem>>, %arg11: memref<256x128xbf16, #tpu.memory_space<vmem>>, %arg12: memref<1x128xf32, #tpu.memory_space<vmem>>, %arg13: memref<1x128xf32, #tpu.memory_space<vmem>>, %arg14: memref<1x128xf32, #tpu.memory_space<vmem>>, %arg15: memref<8x128xf32, #tpu.memory_space<vmem>>) attributes {dimension_semantics = [#tpu.dimension_semantics<parallel>], iteration_bounds = array<i64: 2>, scalar_prefetch = 1 : i64, scratch_operands = 0 : i64, tpu.core_type = #tpu.core_type<tc>, window_params = [{transform_indices = @transform_0, window_bounds = array<i64: 8, 128>}, {pipeline_mode = #tpu.pipeline_mode<synchronous>, transform_indices = @transform_1, window_bounds = array<i64: 128, 384>}, {pipeline_mode = #tpu.pipeline_mode<synchronous>, transform_indices = @transform_2, window_bounds = array<i64: 1, 384>}, {pipeline_mode = #tpu.pipeline_mode<synchronous>, transform_indices = @transform_3, window_bounds = array<i64: 128, 128>}, {pipeline_mode = #tpu.pipeline_mode<synchronous>, transform_indices = @transform_4, window_bounds = array<i64: 1, 128>}, {pipeline_mode = #tpu.pipeline_mode<synchronous>, transform_indices = @transform_5, window_bounds = array<i64: 1, 128>}, {pipeline_mode = #tpu.pipeline_mode<synchronous>, transform_indices = @transform_6, window_bounds = array<i64: 1, 128>}, {pipeline_mode = #tpu.pipeline_mode<synchronous>, transform_indices = @transform_7, window_bounds = array<i64: 128, 256>}, {pipeline_mode = #tpu.pipeline_mode<synchronous>, transform_indices = @transform_8, window_bounds = array<i64: 1, 256>}, {pipeline_mode = #tpu.pipeline_mode<synchronous>, transform_indices = @transform_9, window_bounds = array<i64: 256, 128>}, {pipeline_mode = #tpu.pipeline_mode<synchronous>, transform_indices = @transform_10, window_bounds = array<i64: 1, 128>}, {pipeline_mode = #tpu.pipeline_mode<synchronous>, transform_indices = @transform_11, window_bounds = array<i64: 1, 128>}, {pipeline_mode = #tpu.pipeline_mode<synchronous>, transform_indices = @transform_12, window_bounds = array<i64: 1, 128>}, {transform_indices = @transform_13, window_bounds = array<i64: 8, 128>}]} {
    %c0 = arith.constant 0 : index
    %c0_0 = arith.constant 0 : index
    %0 = vector.load %arg2[%c0, %c0_0] : memref<8x128xf32, #tpu.memory_space<vmem>>, vector<8x128xf32>
    %1 = arith.truncf %0 : vector<8x128xf32> to vector<8x128xbf16>
    %c0_1 = arith.constant 0 : index
    %c0_2 = arith.constant 0 : index
    %2 = vector.load %arg3[%c0_1, %c0_2] : memref<128x384xbf16, #tpu.memory_space<vmem>>, vector<128x384xbf16>
    %cst = arith.constant dense<0.000000e+00> : vector<8x384xf32>
    %3 = tpu.matmul %1, %2, %cst {dimension_numbers = #tpu.dot_dimension_numbers<[1], [0], [0], [1], [0, 0, 1, 1], [], []>} : vector<8x128xbf16>, vector<128x384xbf16>, vector<8x384xf32> -> vector<8x384xf32>
    %c0_3 = arith.constant 0 : index
    %c0_4 = arith.constant 0 : index
    %4 = vector.load %arg4[%c0_3, %c0_4] : memref<1x384xf32, #tpu.memory_space<vmem>>, vector<1x384xf32>
    %5 = vector.broadcast %4 : vector<1x384xf32> to vector<8x384xf32>
    %6 = arith.addf %3, %5 : vector<8x384xf32>
    %7 = arith.index_cast %arg0 : i32 to index
    %8 = memref.load %arg1[%7] : memref<2xi32, #tpu.memory_space<smem>>
    %9 = tpu.iota {dimensions = array<i32: 1>} : vector<8x8xi32>
    %10 = vector.broadcast %8 : i32 to vector<8x8xi32>
    %11 = arith.cmpi slt, %9, %10 : vector<8x8xi32>
    %12 = vector.extract_strided_slice %6 {offsets = [0, 0], sizes = [8, 32], strides = [1, 1]} : vector<8x384xf32> to vector<8x32xf32>
    %13 = arith.truncf %12 : vector<8x32xf32> to vector<8x32xbf16>
    %14 = vector.extract_strided_slice %6 {offsets = [0, 128], sizes = [8, 32], strides = [1, 1]} : vector<8x384xf32> to vector<8x32xf32>
    %15 = arith.truncf %14 : vector<8x32xf32> to vector<8x32xbf16>
    %16 = vector.extract_strided_slice %6 {offsets = [0, 256], sizes = [8, 32], strides = [1, 1]} : vector<8x384xf32> to vector<8x32xf32>
    %17 = arith.truncf %16 : vector<8x32xf32> to vector<8x32xbf16>
    %cst_5 = arith.constant dense<0.000000e+00> : vector<8x8xf32>
    %18 = tpu.matmul %13, %15, %cst_5 {dimension_numbers = #tpu.dot_dimension_numbers<[1], [1], [0], [0], [0, 0, 1, 0], [], []>} : vector<8x32xbf16>, vector<8x32xbf16>, vector<8x8xf32> -> vector<8x8xf32>
    %cst_6 = arith.constant 0.176776692 : f32
    %19 = vector.broadcast %cst_6 : f32 to vector<8x8xf32>
    %20 = arith.mulf %18, %19 : vector<8x8xf32>
    %cst_7 = arith.constant -1.000000e+06 : f32
    %21 = vector.broadcast %cst_7 : f32 to vector<8x8xf32>
    %22 = arith.select %11, %20, %21 : vector<8x8xi1>, vector<8x8xf32>
    %cst_8 = arith.constant dense<0xFF800000> : vector<8xf32>
    %23 = vector.multi_reduction <maximumf>, %22, %cst_8 [1] : vector<8x8xf32> to vector<8xf32>
    %24 = vector.shape_cast %23 : vector<8xf32> to vector<8x1xf32>
    %25 = vector.broadcast %24 : vector<8x1xf32> to vector<8x8xf32>
    %26 = arith.subf %22, %25 : vector<8x8xf32>
    %27 = math.exp %26 : vector<8x8xf32>
    %cst_9 = arith.constant dense<0.000000e+00> : vector<8xf32>
    %28 = vector.multi_reduction <add>, %27, %cst_9 [1] : vector<8x8xf32> to vector<8xf32>
    %29 = vector.shape_cast %28 : vector<8xf32> to vector<8x1xf32>
    %30 = tpu.reciprocal %29 {approx = true} : vector<8x1xf32> -> vector<8x1xf32>
    %31 = vector.broadcast %30 : vector<8x1xf32> to vector<8x8xf32>
    %32 = arith.mulf %27, %31 : vector<8x8xf32>
    %33 = arith.truncf %32 : vector<8x8xf32> to vector<8x8xbf16>
    %cst_10 = arith.constant dense<0.000000e+00> : vector<8x32xf32>
    %34 = tpu.matmul %33, %17, %cst_10 {dimension_numbers = #tpu.dot_dimension_numbers<[1], [0], [0], [1], [0, 0, 1, 1], [], []>} : vector<8x8xbf16>, vector<8x32xbf16>, vector<8x32xf32> -> vector<8x32xf32>
    %35 = vector.extract_strided_slice %6 {offsets = [0, 32], sizes = [8, 32], strides = [1, 1]} : vector<8x384xf32> to vector<8x32xf32>
    %36 = arith.truncf %35 : vector<8x32xf32> to vector<8x32xbf16>
    %37 = vector.extract_strided_slice %6 {offsets = [0, 160], sizes = [8, 32], strides = [1, 1]} : vector<8x384xf32> to vector<8x32xf32>
    %38 = arith.truncf %37 : vector<8x32xf32> to vector<8x32xbf16>
    %39 = vector.extract_strided_slice %6 {offsets = [0, 288], sizes = [8, 32], strides = [1, 1]} : vector<8x384xf32> to vector<8x32xf32>
    %40 = arith.truncf %39 : vector<8x32xf32> to vector<8x32xbf16>
    %cst_11 = arith.constant dense<0.000000e+00> : vector<8x8xf32>
    %41 = tpu.matmul %36, %38, %cst_11 {dimension_numbers = #tpu.dot_dimension_numbers<[1], [1], [0], [0], [0, 0, 1, 0], [], []>} : vector<8x32xbf16>, vector<8x32xbf16>, vector<8x8xf32> -> vector<8x8xf32>
    %cst_12 = arith.constant 0.176776692 : f32
    %42 = vector.broadcast %cst_12 : f32 to vector<8x8xf32>
    %43 = arith.mulf %41, %42 : vector<8x8xf32>
    %cst_13 = arith.constant -1.000000e+06 : f32
    %44 = vector.broadcast %cst_13 : f32 to vector<8x8xf32>
    %45 = arith.select %11, %43, %44 : vector<8x8xi1>, vector<8x8xf32>
    %cst_14 = arith.constant dense<0xFF800000> : vector<8xf32>
    %46 = vector.multi_reduction <maximumf>, %45, %cst_14 [1] : vector<8x8xf32> to vector<8xf32>
    %47 = vector.shape_cast %46 : vector<8xf32> to vector<8x1xf32>
    %48 = vector.broadcast %47 : vector<8x1xf32> to vector<8x8xf32>
    %49 = arith.subf %45, %48 : vector<8x8xf32>
    %50 = math.exp %49 : vector<8x8xf32>
    %cst_15 = arith.constant dense<0.000000e+00> : vector<8xf32>
    %51 = vector.multi_reduction <add>, %50, %cst_15 [1] : vector<8x8xf32> to vector<8xf32>
    %52 = vector.shape_cast %51 : vector<8xf32> to vector<8x1xf32>
    %53 = tpu.reciprocal %52 {approx = true} : vector<8x1xf32> -> vector<8x1xf32>
    %54 = vector.broadcast %53 : vector<8x1xf32> to vector<8x8xf32>
    %55 = arith.mulf %50, %54 : vector<8x8xf32>
    %56 = arith.truncf %55 : vector<8x8xf32> to vector<8x8xbf16>
    %cst_16 = arith.constant dense<0.000000e+00> : vector<8x32xf32>
    %57 = tpu.matmul %56, %40, %cst_16 {dimension_numbers = #tpu.dot_dimension_numbers<[1], [0], [0], [1], [0, 0, 1, 1], [], []>} : vector<8x8xbf16>, vector<8x32xbf16>, vector<8x32xf32> -> vector<8x32xf32>
    %58 = vector.extract_strided_slice %6 {offsets = [0, 64], sizes = [8, 32], strides = [1, 1]} : vector<8x384xf32> to vector<8x32xf32>
    %59 = arith.truncf %58 : vector<8x32xf32> to vector<8x32xbf16>
    %60 = vector.extract_strided_slice %6 {offsets = [0, 192], sizes = [8, 32], strides = [1, 1]} : vector<8x384xf32> to vector<8x32xf32>
    %61 = arith.truncf %60 : vector<8x32xf32> to vector<8x32xbf16>
    %62 = vector.extract_strided_slice %6 {offsets = [0, 320], sizes = [8, 32], strides = [1, 1]} : vector<8x384xf32> to vector<8x32xf32>
    %63 = arith.truncf %62 : vector<8x32xf32> to vector<8x32xbf16>
    %cst_17 = arith.constant dense<0.000000e+00> : vector<8x8xf32>
    %64 = tpu.matmul %59, %61, %cst_17 {dimension_numbers = #tpu.dot_dimension_numbers<[1], [1], [0], [0], [0, 0, 1, 0], [], []>} : vector<8x32xbf16>, vector<8x32xbf16>, vector<8x8xf32> -> vector<8x8xf32>
    %cst_18 = arith.constant 0.176776692 : f32
    %65 = vector.broadcast %cst_18 : f32 to vector<8x8xf32>
    %66 = arith.mulf %64, %65 : vector<8x8xf32>
    %cst_19 = arith.constant -1.000000e+06 : f32
    %67 = vector.broadcast %cst_19 : f32 to vector<8x8xf32>
    %68 = arith.select %11, %66, %67 : vector<8x8xi1>, vector<8x8xf32>
    %cst_20 = arith.constant dense<0xFF800000> : vector<8xf32>
    %69 = vector.multi_reduction <maximumf>, %68, %cst_20 [1] : vector<8x8xf32> to vector<8xf32>
    %70 = vector.shape_cast %69 : vector<8xf32> to vector<8x1xf32>
    %71 = vector.broadcast %70 : vector<8x1xf32> to vector<8x8xf32>
    %72 = arith.subf %68, %71 : vector<8x8xf32>
    %73 = math.exp %72 : vector<8x8xf32>
    %cst_21 = arith.constant dense<0.000000e+00> : vector<8xf32>
    %74 = vector.multi_reduction <add>, %73, %cst_21 [1] : vector<8x8xf32> to vector<8xf32>
    %75 = vector.shape_cast %74 : vector<8xf32> to vector<8x1xf32>
    %76 = tpu.reciprocal %75 {approx = true} : vector<8x1xf32> -> vector<8x1xf32>
    %77 = vector.broadcast %76 : vector<8x1xf32> to vector<8x8xf32>
    %78 = arith.mulf %73, %77 : vector<8x8xf32>
    %79 = arith.truncf %78 : vector<8x8xf32> to vector<8x8xbf16>
    %cst_22 = arith.constant dense<0.000000e+00> : vector<8x32xf32>
    %80 = tpu.matmul %79, %63, %cst_22 {dimension_numbers = #tpu.dot_dimension_numbers<[1], [0], [0], [1], [0, 0, 1, 1], [], []>} : vector<8x8xbf16>, vector<8x32xbf16>, vector<8x32xf32> -> vector<8x32xf32>
    %81 = vector.extract_strided_slice %6 {offsets = [0, 96], sizes = [8, 32], strides = [1, 1]} : vector<8x384xf32> to vector<8x32xf32>
    %82 = arith.truncf %81 : vector<8x32xf32> to vector<8x32xbf16>
    %83 = vector.extract_strided_slice %6 {offsets = [0, 224], sizes = [8, 32], strides = [1, 1]} : vector<8x384xf32> to vector<8x32xf32>
    %84 = arith.truncf %83 : vector<8x32xf32> to vector<8x32xbf16>
    %85 = vector.extract_strided_slice %6 {offsets = [0, 352], sizes = [8, 32], strides = [1, 1]} : vector<8x384xf32> to vector<8x32xf32>
    %86 = arith.truncf %85 : vector<8x32xf32> to vector<8x32xbf16>
    %cst_23 = arith.constant dense<0.000000e+00> : vector<8x8xf32>
    %87 = tpu.matmul %82, %84, %cst_23 {dimension_numbers = #tpu.dot_dimension_numbers<[1], [1], [0], [0], [0, 0, 1, 0], [], []>} : vector<8x32xbf16>, vector<8x32xbf16>, vector<8x8xf32> -> vector<8x8xf32>
    %cst_24 = arith.constant 0.176776692 : f32
    %88 = vector.broadcast %cst_24 : f32 to vector<8x8xf32>
    %89 = arith.mulf %87, %88 : vector<8x8xf32>
    %cst_25 = arith.constant -1.000000e+06 : f32
    %90 = vector.broadcast %cst_25 : f32 to vector<8x8xf32>
    %91 = arith.select %11, %89, %90 : vector<8x8xi1>, vector<8x8xf32>
    %cst_26 = arith.constant dense<0xFF800000> : vector<8xf32>
    %92 = vector.multi_reduction <maximumf>, %91, %cst_26 [1] : vector<8x8xf32> to vector<8xf32>
    %93 = vector.shape_cast %92 : vector<8xf32> to vector<8x1xf32>
    %94 = vector.broadcast %93 : vector<8x1xf32> to vector<8x8xf32>
    %95 = arith.subf %91, %94 : vector<8x8xf32>
    %96 = math.exp %95 : vector<8x8xf32>
    %cst_27 = arith.constant dense<0.000000e+00> : vector<8xf32>
    %97 = vector.multi_reduction <add>, %96, %cst_27 [1] : vector<8x8xf32> to vector<8xf32>
    %98 = vector.shape_cast %97 : vector<8xf32> to vector<8x1xf32>
    %99 = tpu.reciprocal %98 {approx = true} : vector<8x1xf32> -> vector<8x1xf32>
    %100 = vector.broadcast %99 : vector<8x1xf32> to vector<8x8xf32>
    %101 = arith.mulf %96, %100 : vector<8x8xf32>
    %102 = arith.truncf %101 : vector<8x8xf32> to vector<8x8xbf16>
    %cst_28 = arith.constant dense<0.000000e+00> : vector<8x32xf32>
    %103 = tpu.matmul %102, %86, %cst_28 {dimension_numbers = #tpu.dot_dimension_numbers<[1], [0], [0], [1], [0, 0, 1, 1], [], []>} : vector<8x8xbf16>, vector<8x32xbf16>, vector<8x32xf32> -> vector<8x32xf32>
    %104 = tpu.concatenate %34, %57, %80, %103 in 1 : vector<8x32xf32>, vector<8x32xf32>, vector<8x32xf32>, vector<8x32xf32> -> vector<8x128xf32>
    %105 = arith.truncf %104 : vector<8x128xf32> to vector<8x128xbf16>
    %c0_29 = arith.constant 0 : index
    %c0_30 = arith.constant 0 : index
    %106 = vector.load %arg5[%c0_29, %c0_30] : memref<128x128xbf16, #tpu.memory_space<vmem>>, vector<128x128xbf16>
    %cst_31 = arith.constant dense<0.000000e+00> : vector<8x128xf32>
    %107 = tpu.matmul %105, %106, %cst_31 {dimension_numbers = #tpu.dot_dimension_numbers<[1], [0], [0], [1], [0, 0, 1, 1], [], []>} : vector<8x128xbf16>, vector<128x128xbf16>, vector<8x128xf32> -> vector<8x128xf32>
    %c0_32 = arith.constant 0 : index
    %c0_33 = arith.constant 0 : index
    %108 = vector.load %arg6[%c0_32, %c0_33] : memref<1x128xf32, #tpu.memory_space<vmem>>, vector<1x128xf32>
    %109 = vector.broadcast %108 : vector<1x128xf32> to vector<8x128xf32>
    %110 = arith.addf %107, %109 : vector<8x128xf32>
    %111 = arith.addf %110, %0 : vector<8x128xf32>
    %c0_34 = arith.constant 0 : index
    %c0_35 = arith.constant 0 : index
    %112 = vector.load %arg7[%c0_34, %c0_35] : memref<1x128xf32, #tpu.memory_space<vmem>>, vector<1x128xf32>
    %c0_36 = arith.constant 0 : index
    %c0_37 = arith.constant 0 : index
    %113 = vector.load %arg8[%c0_36, %c0_37] : memref<1x128xf32, #tpu.memory_space<vmem>>, vector<1x128xf32>
    %cst_38 = arith.constant dense<0.000000e+00> : vector<8xf32>
    %114 = vector.multi_reduction <add>, %111, %cst_38 [1] : vector<8x128xf32> to vector<8xf32>
    %115 = vector.shape_cast %114 : vector<8xf32> to vector<8x1xf32>
    %cst_39 = arith.constant 1.280000e+02 : f32
    %116 = vector.broadcast %cst_39 : f32 to vector<8x1xf32>
    %117 = arith.divf %115, %116 : vector<8x1xf32>
    %118 = vector.broadcast %117 : vector<8x1xf32> to vector<8x128xf32>
    %119 = arith.subf %111, %118 : vector<8x128xf32>
    %120 = arith.mulf %119, %119 : vector<8x128xf32>
    %cst_40 = arith.constant dense<0.000000e+00> : vector<8xf32>
    %121 = vector.multi_reduction <add>, %120, %cst_40 [1] : vector<8x128xf32> to vector<8xf32>
    %122 = vector.shape_cast %121 : vector<8xf32> to vector<8x1xf32>
    %cst_41 = arith.constant 1.280000e+02 : f32
    %123 = vector.broadcast %cst_41 : f32 to vector<8x1xf32>
    %124 = arith.divf %122, %123 : vector<8x1xf32>
    %cst_42 = arith.constant 9.99999974E-6 : f32
    %125 = vector.broadcast %cst_42 : f32 to vector<8x1xf32>
    %126 = arith.addf %124, %125 : vector<8x1xf32>
    %127 = math.rsqrt %126 : vector<8x1xf32>
    %128 = vector.broadcast %127 : vector<8x1xf32> to vector<8x128xf32>
    %129 = arith.mulf %119, %128 : vector<8x128xf32>
    %130 = vector.broadcast %112 : vector<1x128xf32> to vector<8x128xf32>
    %131 = arith.mulf %129, %130 : vector<8x128xf32>
    %132 = vector.broadcast %113 : vector<1x128xf32> to vector<8x128xf32>
    %133 = arith.addf %131, %132 : vector<8x128xf32>
    %134 = arith.truncf %133 : vector<8x128xf32> to vector<8x128xbf16>
    %c0_43 = arith.constant 0 : index
    %c0_44 = arith.constant 0 : index
    %135 = vector.load %arg9[%c0_43, %c0_44] : memref<128x256xbf16, #tpu.memory_space<vmem>>, vector<128x256xbf16>
    %cst_45 = arith.constant dense<0.000000e+00> : vector<8x256xf32>
    %136 = tpu.matmul %134, %135, %cst_45 {dimension_numbers = #tpu.dot_dimension_numbers<[1], [0], [0], [1], [0, 0, 1, 1], [], []>} : vector<8x128xbf16>, vector<128x256xbf16>, vector<8x256xf32> -> vector<8x256xf32>
    %c0_46 = arith.constant 0 : index
    %c0_47 = arith.constant 0 : index
    %137 = vector.load %arg10[%c0_46, %c0_47] : memref<1x256xf32, #tpu.memory_space<vmem>>, vector<1x256xf32>
    %138 = vector.broadcast %137 : vector<1x256xf32> to vector<8x256xf32>
    %139 = arith.addf %136, %138 : vector<8x256xf32>
    %cst_48 = arith.constant 0.000000e+00 : f32
    %140 = vector.broadcast %cst_48 : f32 to vector<8x256xf32>
    %141 = arith.maximumf %139, %140 : vector<8x256xf32>
    %142 = arith.truncf %141 : vector<8x256xf32> to vector<8x256xbf16>
    %c0_49 = arith.constant 0 : index
    %c0_50 = arith.constant 0 : index
    %143 = vector.load %arg11[%c0_49, %c0_50] : memref<256x128xbf16, #tpu.memory_space<vmem>>, vector<256x128xbf16>
    %cst_51 = arith.constant dense<0.000000e+00> : vector<8x128xf32>
    %144 = tpu.matmul %142, %143, %cst_51 {dimension_numbers = #tpu.dot_dimension_numbers<[1], [0], [0], [1], [0, 0, 1, 1], [], []>} : vector<8x256xbf16>, vector<256x128xbf16>, vector<8x128xf32> -> vector<8x128xf32>
    %c0_52 = arith.constant 0 : index
    %c0_53 = arith.constant 0 : index
    %145 = vector.load %arg12[%c0_52, %c0_53] : memref<1x128xf32, #tpu.memory_space<vmem>>, vector<1x128xf32>
    %146 = vector.broadcast %145 : vector<1x128xf32> to vector<8x128xf32>
    %147 = arith.addf %144, %146 : vector<8x128xf32>
    %148 = arith.addf %147, %133 : vector<8x128xf32>
    %c0_54 = arith.constant 0 : index
    %c0_55 = arith.constant 0 : index
    %149 = vector.load %arg13[%c0_54, %c0_55] : memref<1x128xf32, #tpu.memory_space<vmem>>, vector<1x128xf32>
    %c0_56 = arith.constant 0 : index
    %c0_57 = arith.constant 0 : index
    %150 = vector.load %arg14[%c0_56, %c0_57] : memref<1x128xf32, #tpu.memory_space<vmem>>, vector<1x128xf32>
    %cst_58 = arith.constant dense<0.000000e+00> : vector<8xf32>
    %151 = vector.multi_reduction <add>, %148, %cst_58 [1] : vector<8x128xf32> to vector<8xf32>
    %152 = vector.shape_cast %151 : vector<8xf32> to vector<8x1xf32>
    %cst_59 = arith.constant 1.280000e+02 : f32
    %153 = vector.broadcast %cst_59 : f32 to vector<8x1xf32>
    %154 = arith.divf %152, %153 : vector<8x1xf32>
    %155 = vector.broadcast %154 : vector<8x1xf32> to vector<8x128xf32>
    %156 = arith.subf %148, %155 : vector<8x128xf32>
    %157 = arith.mulf %156, %156 : vector<8x128xf32>
    %cst_60 = arith.constant dense<0.000000e+00> : vector<8xf32>
    %158 = vector.multi_reduction <add>, %157, %cst_60 [1] : vector<8x128xf32> to vector<8xf32>
    %159 = vector.shape_cast %158 : vector<8xf32> to vector<8x1xf32>
    %cst_61 = arith.constant 1.280000e+02 : f32
    %160 = vector.broadcast %cst_61 : f32 to vector<8x1xf32>
    %161 = arith.divf %159, %160 : vector<8x1xf32>
    %cst_62 = arith.constant 9.99999974E-6 : f32
    %162 = vector.broadcast %cst_62 : f32 to vector<8x1xf32>
    %163 = arith.addf %161, %162 : vector<8x1xf32>
    %164 = math.rsqrt %163 : vector<8x1xf32>
    %165 = vector.broadcast %164 : vector<8x1xf32> to vector<8x128xf32>
    %166 = arith.mulf %156, %165 : vector<8x128xf32>
    %167 = vector.broadcast %149 : vector<1x128xf32> to vector<8x128xf32>
    %168 = arith.mulf %166, %167 : vector<8x128xf32>
    %169 = vector.broadcast %150 : vector<1x128xf32> to vector<8x128xf32>
    %170 = arith.addf %168, %169 : vector<8x128xf32>
    %c0_63 = arith.constant 0 : index
    %c0_64 = arith.constant 0 : index
    %171 = vector.load %arg15[%c0_63, %c0_64] : memref<8x128xf32, #tpu.memory_space<vmem>>, vector<8x128xf32>
    tpu.vector_store %arg15[%c0_63, %c0_64], %170 {strides = array<i32>} : memref<8x128xf32, #tpu.memory_space<vmem>>, vector<8x128xf32>,
    return
  }
  func.func @transform_0(%arg0: i32, %arg1: memref<2xi32, #tpu.memory_space<smem>>) -> (i32, i32) {
    %c0_i32 = arith.constant 0 : i32
    %c0_i32_0 = arith.constant 0 : i32
    return %arg0, %c0_i32 : i32, i32
  }
  func.func @transform_1(%arg0: i32, %arg1: memref<2xi32, #tpu.memory_space<smem>>) -> (i32, i32) {
    %c0_i32 = arith.constant 0 : i32
    %c0_i32_0 = arith.constant 0 : i32
    %c0_i32_1 = arith.constant 0 : i32
    return %c0_i32, %c0_i32_0 : i32, i32
  }
  func.func @transform_2(%arg0: i32, %arg1: memref<2xi32, #tpu.memory_space<smem>>) -> (i32, i32) {
    %c0_i32 = arith.constant 0 : i32
    %c0_i32_0 = arith.constant 0 : i32
    %c0_i32_1 = arith.constant 0 : i32
    return %c0_i32, %c0_i32_0 : i32, i32
  }
  func.func @transform_3(%arg0: i32, %arg1: memref<2xi32, #tpu.memory_space<smem>>) -> (i32, i32) {
    %c0_i32 = arith.constant 0 : i32
    %c0_i32_0 = arith.constant 0 : i32
    %c0_i32_1 = arith.constant 0 : i32
    return %c0_i32, %c0_i32_0 : i32, i32
  }
  func.func @transform_4(%arg0: i32, %arg1: memref<2xi32, #tpu.memory_space<smem>>) -> (i32, i32) {
    %c0_i32 = arith.constant 0 : i32
    %c0_i32_0 = arith.constant 0 : i32
    %c0_i32_1 = arith.constant 0 : i32
    return %c0_i32, %c0_i32_0 : i32, i32
  }
  func.func @transform_5(%arg0: i32, %arg1: memref<2xi32, #tpu.memory_space<smem>>) -> (i32, i32) {
    %c0_i32 = arith.constant 0 : i32
    %c0_i32_0 = arith.constant 0 : i32
    %c0_i32_1 = arith.constant 0 : i32
    return %c0_i32, %c0_i32_0 : i32, i32
  }
  func.func @transform_6(%arg0: i32, %arg1: memref<2xi32, #tpu.memory_space<smem>>) -> (i32, i32) {
    %c0_i32 = arith.constant 0 : i32
    %c0_i32_0 = arith.constant 0 : i32
    %c0_i32_1 = arith.constant 0 : i32
    return %c0_i32, %c0_i32_0 : i32, i32
  }
  func.func @transform_7(%arg0: i32, %arg1: memref<2xi32, #tpu.memory_space<smem>>) -> (i32, i32) {
    %c0_i32 = arith.constant 0 : i32
    %c0_i32_0 = arith.constant 0 : i32
    %c0_i32_1 = arith.constant 0 : i32
    return %c0_i32, %c0_i32_0 : i32, i32
  }
  func.func @transform_8(%arg0: i32, %arg1: memref<2xi32, #tpu.memory_space<smem>>) -> (i32, i32) {
    %c0_i32 = arith.constant 0 : i32
    %c0_i32_0 = arith.constant 0 : i32
    %c0_i32_1 = arith.constant 0 : i32
    return %c0_i32, %c0_i32_0 : i32, i32
  }
  func.func @transform_9(%arg0: i32, %arg1: memref<2xi32, #tpu.memory_space<smem>>) -> (i32, i32) {
    %c0_i32 = arith.constant 0 : i32
    %c0_i32_0 = arith.constant 0 : i32
    %c0_i32_1 = arith.constant 0 : i32
    return %c0_i32, %c0_i32_0 : i32, i32
  }
  func.func @transform_10(%arg0: i32, %arg1: memref<2xi32, #tpu.memory_space<smem>>) -> (i32, i32) {
    %c0_i32 = arith.constant 0 : i32
    %c0_i32_0 = arith.constant 0 : i32
    %c0_i32_1 = arith.constant 0 : i32
    return %c0_i32, %c0_i32_0 : i32, i32
  }
  func.func @transform_11(%arg0: i32, %arg1: memref<2xi32, #tpu.memory_space<smem>>) -> (i32, i32) {
    %c0_i32 = arith.constant 0 : i32
    %c0_i32_0 = arith.constant 0 : i32
    %c0_i32_1 = arith.constant 0 : i32
    return %c0_i32, %c0_i32_0 : i32, i32
  }
  func.func @transform_12(%arg0: i32, %arg1: memref<2xi32, #tpu.memory_space<smem>>) -> (i32, i32) {
    %c0_i32 = arith.constant 0 : i32
    %c0_i32_0 = arith.constant 0 : i32
    %c0_i32_1 = arith.constant 0 : i32
    return %c0_i32, %c0_i32_0 : i32, i32
  }
  func.func @transform_13(%arg0: i32, %arg1: memref<2xi32, #tpu.memory_space<smem>>) -> (i32, i32) {
    %c0_i32 = arith.constant 0 : i32
    %c0_i32_0 = arith.constant 0 : i32
    return %arg0, %c0_i32 : i32, i32
  }
}

module attributes {stable_mosaic.version = 11 : i64} {
  func.func @_encoder_block_kernel(%arg0: i32, %arg1: memref<2xi32, #tpu.memory_space<smem>>, %arg2: memref<8x128xf32, #tpu.memory_space<vmem>>, %arg3: memref<128x384xbf16, #tpu.memory_space<vmem>>, %arg4: memref<1x384xf32, #tpu.memory_space<vmem>>, %arg5: memref<128x128xbf16, #tpu.memory_space<vmem>>, %arg6: memref<1x128xf32, #tpu.memory_space<vmem>>, %arg7: memref<1x128xf32, #tpu.memory_space<vmem>>, %arg8: memref<1x128xf32, #tpu.memory_space<vmem>>, %arg9: memref<128x256xbf16, #tpu.memory_space<vmem>>, %arg10: memref<1x256xf32, #tpu.memory_space<vmem>>, %arg11: memref<256x128xbf16, #tpu.memory_space<vmem>>, %arg12: memref<1x128xf32, #tpu.memory_space<vmem>>, %arg13: memref<1x128xf32, #tpu.memory_space<vmem>>, %arg14: memref<1x128xf32, #tpu.memory_space<vmem>>, %arg15: memref<8x128xf32, #tpu.memory_space<vmem>>) attributes {dimension_semantics = [#tpu.dimension_semantics<parallel>], iteration_bounds = array<i64: 2>, scalar_prefetch = 1 : i64, scratch_operands = 0 : i64, tpu.core_type = #tpu.core_type<tc>, window_params = [{transform_indices = @transform_0, window_bounds = array<i64: 8, 128>}, {pipeline_mode = #tpu.pipeline_mode<synchronous>, transform_indices = @transform_1, window_bounds = array<i64: 128, 384>}, {pipeline_mode = #tpu.pipeline_mode<synchronous>, transform_indices = @transform_2, window_bounds = array<i64: 1, 384>}, {pipeline_mode = #tpu.pipeline_mode<synchronous>, transform_indices = @transform_3, window_bounds = array<i64: 128, 128>}, {pipeline_mode = #tpu.pipeline_mode<synchronous>, transform_indices = @transform_4, window_bounds = array<i64: 1, 128>}, {pipeline_mode = #tpu.pipeline_mode<synchronous>, transform_indices = @transform_5, window_bounds = array<i64: 1, 128>}, {pipeline_mode = #tpu.pipeline_mode<synchronous>, transform_indices = @transform_6, window_bounds = array<i64: 1, 128>}, {pipeline_mode = #tpu.pipeline_mode<synchronous>, transform_indices = @transform_7, window_bounds = array<i64: 128, 256>}, {pipeline_mode = #tpu.pipeline_mode<synchronous>, transform_indices = @transform_8, window_bounds = array<i64: 1, 256>}, {pipeline_mode = #tpu.pipeline_mode<synchronous>, transform_indices = @transform_9, window_bounds = array<i64: 256, 128>}, {pipeline_mode = #tpu.pipeline_mode<synchronous>, transform_indices = @transform_10, window_bounds = array<i64: 1, 128>}, {pipeline_mode = #tpu.pipeline_mode<synchronous>, transform_indices = @transform_11, window_bounds = array<i64: 1, 128>}, {pipeline_mode = #tpu.pipeline_mode<synchronous>, transform_indices = @transform_12, window_bounds = array<i64: 1, 128>}, {transform_indices = @transform_13, window_bounds = array<i64: 8, 128>}]} {
    %c0 = arith.constant 0 : index
    %c0_0 = arith.constant 0 : index
    %0 = vector.load %arg2[%c0, %c0_0] : memref<8x128xf32, #tpu.memory_space<vmem>>, vector<8x128xf32>
    %1 = arith.truncf %0 : vector<8x128xf32> to vector<8x128xbf16>
    %c0_1 = arith.constant 0 : index
    %c0_2 = arith.constant 0 : index
    %2 = vector.load %arg3[%c0_1, %c0_2] : memref<128x384xbf16, #tpu.memory_space<vmem>>, vector<128x384xbf16>
    %cst = arith.constant dense<0.000000e+00> : vector<8x384xf32>
    %3 = tpu.matmul %1, %2, %cst {dimension_numbers = #tpu.dot_dimension_numbers<[1], [0], [0], [1], [0, 0, 1, 1], [], []>} : vector<8x128xbf16>, vector<128x384xbf16>, vector<8x384xf32> -> vector<8x384xf32>
    %c0_3 = arith.constant 0 : index
    %c0_4 = arith.constant 0 : index
    %4 = vector.load %arg4[%c0_3, %c0_4] : memref<1x384xf32, #tpu.memory_space<vmem>>, vector<1x384xf32>
    %5 = vector.broadcast %4 : vector<1x384xf32> to vector<8x384xf32>
    %6 = arith.addf %3, %5 : vector<8x384xf32>
    %7 = arith.index_cast %arg0 : i32 to index
    %8 = memref.load %arg1[%7] : memref<2xi32, #tpu.memory_space<smem>>
    %9 = tpu.iota {dimensions = array<i32: 1>} : vector<8x8xi32>
    %10 = vector.broadcast %8 : i32 to vector<8x8xi32>
    %11 = arith.cmpi slt, %9, %10 : vector<8x8xi32>
    %12 = vector.extract_strided_slice %6 {offsets = [0, 0], sizes = [8, 32], strides = [1, 1]} : vector<8x384xf32> to vector<8x32xf32>
    %13 = arith.truncf %12 : vector<8x32xf32> to vector<8x32xbf16>
    %14 = vector.extract_strided_slice %6 {offsets = [0, 128], sizes = [8, 32], strides = [1, 1]} : vector<8x384xf32> to vector<8x32xf32>
    %15 = arith.truncf %14 : vector<8x32xf32> to vector<8x32xbf16>
    %16 = vector.extract_strided_slice %6 {offsets = [0, 256], sizes = [8, 32], strides = [1, 1]} : vector<8x384xf32> to vector<8x32xf32>
    %17 = arith.truncf %16 : vector<8x32xf32> to vector<8x32xbf16>
    %cst_5 = arith.constant dense<0.000000e+00> : vector<8x8xf32>
    %18 = tpu.matmul %13, %15, %cst_5 {dimension_numbers = #tpu.dot_dimension_numbers<[1], [1], [0], [0], [0, 0, 1, 0], [], []>} : vector<8x32xbf16>, vector<8x32xbf16>, vector<8x8xf32> -> vector<8x8xf32>
    %cst_6 = arith.constant 0.176776692 : f32
    %19 = vector.broadcast %cst_6 : f32 to vector<8x8xf32>
    %20 = arith.mulf %18, %19 : vector<8x8xf32>
    %cst_7 = arith.constant -1.000000e+06 : f32
    %21 = vector.broadcast %cst_7 : f32 to vector<8x8xf32>
    %22 = arith.select %11, %20, %21 : vector<8x8xi1>, vector<8x8xf32>
    %cst_8 = arith.constant dense<0xFF800000> : vector<8xf32>
    %23 = vector.multi_reduction <maximumf>, %22, %cst_8 [1] : vector<8x8xf32> to vector<8xf32>
    %24 = vector.shape_cast %23 : vector<8xf32> to vector<8x1xf32>
    %25 = vector.broadcast %24 : vector<8x1xf32> to vector<8x8xf32>
    %26 = arith.subf %22, %25 : vector<8x8xf32>
    %27 = math.exp %26 : vector<8x8xf32>
    %cst_9 = arith.constant dense<0.000000e+00> : vector<8xf32>
    %28 = vector.multi_reduction <add>, %27, %cst_9 [1] : vector<8x8xf32> to vector<8xf32>
    %29 = vector.shape_cast %28 : vector<8xf32> to vector<8x1xf32>
    %30 = tpu.reciprocal %29 {approx = true} : vector<8x1xf32> -> vector<8x1xf32>
    %31 = vector.broadcast %30 : vector<8x1xf32> to vector<8x8xf32>
    %32 = arith.mulf %27, %31 : vector<8x8xf32>
    %33 = arith.truncf %32 : vector<8x8xf32> to vector<8x8xbf16>
    %cst_10 = arith.constant dense<0.000000e+00> : vector<8x32xf32>
    %34 = tpu.matmul %33, %17, %cst_10 {dimension_numbers = #tpu.dot_dimension_numbers<[1], [0], [0], [1], [0, 0, 1, 1], [], []>} : vector<8x8xbf16>, vector<8x32xbf16>, vector<8x32xf32> -> vector<8x32xf32>
    %35 = vector.extract_strided_slice %6 {offsets = [0, 32], sizes = [8, 32], strides = [1, 1]} : vector<8x384xf32> to vector<8x32xf32>
    %36 = arith.truncf %35 : vector<8x32xf32> to vector<8x32xbf16>
    %37 = vector.extract_strided_slice %6 {offsets = [0, 160], sizes = [8, 32], strides = [1, 1]} : vector<8x384xf32> to vector<8x32xf32>
    %38 = arith.truncf %37 : vector<8x32xf32> to vector<8x32xbf16>
    %39 = vector.extract_strided_slice %6 {offsets = [0, 288], sizes = [8, 32], strides = [1, 1]} : vector<8x384xf32> to vector<8x32xf32>
    %40 = arith.truncf %39 : vector<8x32xf32> to vector<8x32xbf16>
    %cst_11 = arith.constant dense<0.000000e+00> : vector<8x8xf32>
    %41 = tpu.matmul %36, %38, %cst_11 {dimension_numbers = #tpu.dot_dimension_numbers<[1], [1], [0], [0], [0, 0, 1, 0], [], []>} : vector<8x32xbf16>, vector<8x32xbf16>, vector<8x8xf32> -> vector<8x8xf32>
    %cst_12 = arith.constant 0.176776692 : f32
    %42 = vector.broadcast %cst_12 : f32 to vector<8x8xf32>
    %43 = arith.mulf %41, %42 : vector<8x8xf32>
    %cst_13 = arith.constant -1.000000e+06 : f32
    %44 = vector.broadcast %cst_13 : f32 to vector<8x8xf32>
    %45 = arith.select %11, %43, %44 : vector<8x8xi1>, vector<8x8xf32>
    %cst_14 = arith.constant dense<0xFF800000> : vector<8xf32>
    %46 = vector.multi_reduction <maximumf>, %45, %cst_14 [1] : vector<8x8xf32> to vector<8xf32>
    %47 = vector.shape_cast %46 : vector<8xf32> to vector<8x1xf32>
    %48 = vector.broadcast %47 : vector<8x1xf32> to vector<8x8xf32>
    %49 = arith.subf %45, %48 : vector<8x8xf32>
    %50 = math.exp %49 : vector<8x8xf32>
    %cst_15 = arith.constant dense<0.000000e+00> : vector<8xf32>
    %51 = vector.multi_reduction <add>, %50, %cst_15 [1] : vector<8x8xf32> to vector<8xf32>
    %52 = vector.shape_cast %51 : vector<8xf32> to vector<8x1xf32>
    %53 = tpu.reciprocal %52 {approx = true} : vector<8x1xf32> -> vector<8x1xf32>
    %54 = vector.broadcast %53 : vector<8x1xf32> to vector<8x8xf32>
    %55 = arith.mulf %50, %54 : vector<8x8xf32>
    %56 = arith.truncf %55 : vector<8x8xf32> to vector<8x8xbf16>
    %cst_16 = arith.constant dense<0.000000e+00> : vector<8x32xf32>
    %57 = tpu.matmul %56, %40, %cst_16 {dimension_numbers = #tpu.dot_dimension_numbers<[1], [0], [0], [1], [0, 0, 1, 1], [], []>} : vector<8x8xbf16>, vector<8x32xbf16>, vector<8x32xf32> -> vector<8x32xf32>
    %58 = vector.extract_strided_slice %6 {offsets = [0, 64], sizes = [8, 32], strides = [1, 1]} : vector<8x384xf32> to vector<8x32xf32>
    %59 = arith.truncf %58 : vector<8x32xf32> to vector<8x32xbf16>
    %60 = vector.extract_strided_slice %6 {offsets = [0, 192], sizes = [8, 32], strides = [1, 1]} : vector<8x384xf32> to vector<8x32xf32>
    %61 = arith.truncf %60 : vector<8x32xf32> to vector<8x32xbf16>
    %62 = vector.extract_strided_slice %6 {offsets = [0, 320], sizes = [8, 32], strides = [1, 1]} : vector<8x384xf32> to vector<8x32xf32>
    %63 = arith.truncf %62 : vector<8x32xf32> to vector<8x32xbf16>
    %cst_17 = arith.constant dense<0.000000e+00> : vector<8x8xf32>
    %64 = tpu.matmul %59, %61, %cst_17 {dimension_numbers = #tpu.dot_dimension_numbers<[1], [1], [0], [0], [0, 0, 1, 0], [], []>} : vector<8x32xbf16>, vector<8x32xbf16>, vector<8x8xf32> -> vector<8x8xf32>
    %cst_18 = arith.constant 0.176776692 : f32
    %65 = vector.broadcast %cst_18 : f32 to vector<8x8xf32>
    %66 = arith.mulf %64, %65 : vector<8x8xf32>
    %cst_19 = arith.constant -1.000000e+06 : f32
    %67 = vector.broadcast %cst_19 : f32 to vector<8x8xf32>
    %68 = arith.select %11, %66, %67 : vector<8x8xi1>, vector<8x8xf32>
    %cst_20 = arith.constant dense<0xFF800000> : vector<8xf32>
    %69 = vector.multi_reduction <maximumf>, %68, %cst_20 [1] : vector<8x8xf32> to vector<8xf32>
    %70 = vector.shape_cast %69 : vector<8xf32> to vector<8x1xf32>
    %71 = vector.broadcast %70 : vector<8x1xf32> to vector<8x8xf32>
    %72 = arith.subf %68, %71 : vector<8x8xf32>
    %73 = math.exp %72 : vector<8x8xf32>
    %cst_21 = arith.constant dense<0.000000e+00> : vector<8xf32>
    %74 = vector.multi_reduction <add>, %73, %cst_21 [1] : vector<8x8xf32> to vector<8xf32>
    %75 = vector.shape_cast %74 : vector<8xf32> to vector<8x1xf32>
    %76 = tpu.reciprocal %75 {approx = true} : vector<8x1xf32> -> vector<8x1xf32>
    %77 = vector.broadcast %76 : vector<8x1xf32> to vector<8x8xf32>
    %78 = arith.mulf %73, %77 : vector<8x8xf32>
    %79 = arith.truncf %78 : vector<8x8xf32> to vector<8x8xbf16>
    %cst_22 = arith.constant dense<0.000000e+00> : vector<8x32xf32>
    %80 = tpu.matmul %79, %63, %cst_22 {dimension_numbers = #tpu.dot_dimension_numbers<[1], [0], [0], [1], [0, 0, 1, 1], [], []>} : vector<8x8xbf16>, vector<8x32xbf16>, vector<8x32xf32> -> vector<8x32xf32>
    %81 = vector.extract_strided_slice %6 {offsets = [0, 96], sizes = [8, 32], strides = [1, 1]} : vector<8x384xf32> to vector<8x32xf32>
    %82 = arith.truncf %81 : vector<8x32xf32> to vector<8x32xbf16>
    %83 = vector.extract_strided_slice %6 {offsets = [0, 224], sizes = [8, 32], strides = [1, 1]} : vector<8x384xf32> to vector<8x32xf32>
    %84 = arith.truncf %83 : vector<8x32xf32> to vector<8x32xbf16>
    %85 = vector.extract_strided_slice %6 {offsets = [0, 352], sizes = [8, 32], strides = [1, 1]} : vector<8x384xf32> to vector<8x32xf32>
    %86 = arith.truncf %85 : vector<8x32xf32> to vector<8x32xbf16>
    %cst_23 = arith.constant dense<0.000000e+00> : vector<8x8xf32>
    %87 = tpu.matmul %82, %84, %cst_23 {dimension_numbers = #tpu.dot_dimension_numbers<[1], [1], [0], [0], [0, 0, 1, 0], [], []>} : vector<8x32xbf16>, vector<8x32xbf16>, vector<8x8xf32> -> vector<8x8xf32>
    %cst_24 = arith.constant 0.176776692 : f32
    %88 = vector.broadcast %cst_24 : f32 to vector<8x8xf32>
    %89 = arith.mulf %87, %88 : vector<8x8xf32>
    %cst_25 = arith.constant -1.000000e+06 : f32
    %90 = vector.broadcast %cst_25 : f32 to vector<8x8xf32>
    %91 = arith.select %11, %89, %90 : vector<8x8xi1>, vector<8x8xf32>
    %cst_26 = arith.constant dense<0xFF800000> : vector<8xf32>
    %92 = vector.multi_reduction <maximumf>, %91, %cst_26 [1] : vector<8x8xf32> to vector<8xf32>
    %93 = vector.shape_cast %92 : vector<8xf32> to vector<8x1xf32>
    %94 = vector.broadcast %93 : vector<8x1xf32> to vector<8x8xf32>
    %95 = arith.subf %91, %94 : vector<8x8xf32>
    %96 = math.exp %95 : vector<8x8xf32>
    %cst_27 = arith.constant dense<0.000000e+00> : vector<8xf32>
    %97 = vector.multi_reduction <add>, %96, %cst_27 [1] : vector<8x8xf32> to vector<8xf32>
    %98 = vector.shape_cast %97 : vector<8xf32> to vector<8x1xf32>
    %99 = tpu.reciprocal %98 {approx = true} : vector<8x1xf32> -> vector<8x1xf32>
    %100 = vector.broadcast %99 : vector<8x1xf32> to vector<8x8xf32>
    %101 = arith.mulf %96, %100 : vector<8x8xf32>
    %102 = arith.truncf %101 : vector<8x8xf32> to vector<8x8xbf16>
    %cst_28 = arith.constant dense<0.000000e+00> : vector<8x32xf32>
    %103 = tpu.matmul %102, %86, %cst_28 {dimension_numbers = #tpu.dot_dimension_numbers<[1], [0], [0], [1], [0, 0, 1, 1], [], []>} : vector<8x8xbf16>, vector<8x32xbf16>, vector<8x32xf32> -> vector<8x32xf32>
    %104 = tpu.concatenate %34, %57, %80, %103 in 1 : vector<8x32xf32>, vector<8x32xf32>, vector<8x32xf32>, vector<8x32xf32> -> vector<8x128xf32>
    %105 = arith.truncf %104 : vector<8x128xf32> to vector<8x128xbf16>
    %c0_29 = arith.constant 0 : index
    %c0_30 = arith.constant 0 : index
    %106 = vector.load %arg5[%c0_29, %c0_30] : memref<128x128xbf16, #tpu.memory_space<vmem>>, vector<128x128xbf16>
    %cst_31 = arith.constant dense<0.000000e+00> : vector<8x128xf32>
    %107 = tpu.matmul %105, %106, %cst_31 {dimension_numbers = #tpu.dot_dimension_numbers<[1], [0], [0], [1], [0, 0, 1, 1], [], []>} : vector<8x128xbf16>, vector<128x128xbf16>, vector<8x128xf32> -> vector<8x128xf32>
    %c0_32 = arith.constant 0 : index
    %c0_33 = arith.constant 0 : index
    %108 = vector.load %arg6[%c0_32, %c0_33] : memref<1x128xf32, #tpu.memory_space<vmem>>, vector<1x128xf32>
    %109 = vector.broadcast %108 : vector<1x128xf32> to vector<8x128xf32>
    %110 = arith.addf %107, %109 : vector<8x128xf32>
    %111 = arith.addf %110, %0 : vector<8x128xf32>
    %c0_34 = arith.constant 0 : index
    %c0_35 = arith.constant 0 : index
    %112 = vector.load %arg7[%c0_34, %c0_35] : memref<1x128xf32, #tpu.memory_space<vmem>>, vector<1x128xf32>
    %c0_36 = arith.constant 0 : index
    %c0_37 = arith.constant 0 : index
    %113 = vector.load %arg8[%c0_36, %c0_37] : memref<1x128xf32, #tpu.memory_space<vmem>>, vector<1x128xf32>
    %cst_38 = arith.constant dense<0.000000e+00> : vector<8xf32>
    %114 = vector.multi_reduction <add>, %111, %cst_38 [1] : vector<8x128xf32> to vector<8xf32>
    %115 = vector.shape_cast %114 : vector<8xf32> to vector<8x1xf32>
    %cst_39 = arith.constant 1.280000e+02 : f32
    %116 = vector.broadcast %cst_39 : f32 to vector<8x1xf32>
    %117 = arith.divf %115, %116 : vector<8x1xf32>
    %118 = vector.broadcast %117 : vector<8x1xf32> to vector<8x128xf32>
    %119 = arith.subf %111, %118 : vector<8x128xf32>
    %120 = arith.mulf %119, %119 : vector<8x128xf32>
    %cst_40 = arith.constant dense<0.000000e+00> : vector<8xf32>
    %121 = vector.multi_reduction <add>, %120, %cst_40 [1] : vector<8x128xf32> to vector<8xf32>
    %122 = vector.shape_cast %121 : vector<8xf32> to vector<8x1xf32>
    %cst_41 = arith.constant 1.280000e+02 : f32
    %123 = vector.broadcast %cst_41 : f32 to vector<8x1xf32>
    %124 = arith.divf %122, %123 : vector<8x1xf32>
    %cst_42 = arith.constant 9.99999974E-6 : f32
    %125 = vector.broadcast %cst_42 : f32 to vector<8x1xf32>
    %126 = arith.addf %124, %125 : vector<8x1xf32>
    %127 = math.rsqrt %126 : vector<8x1xf32>
    %128 = vector.broadcast %127 : vector<8x1xf32> to vector<8x128xf32>
    %129 = arith.mulf %119, %128 : vector<8x128xf32>
    %130 = vector.broadcast %112 : vector<1x128xf32> to vector<8x128xf32>
    %131 = arith.mulf %129, %130 : vector<8x128xf32>
    %132 = vector.broadcast %113 : vector<1x128xf32> to vector<8x128xf32>
    %133 = arith.addf %131, %132 : vector<8x128xf32>
    %134 = arith.truncf %133 : vector<8x128xf32> to vector<8x128xbf16>
    %c0_43 = arith.constant 0 : index
    %c0_44 = arith.constant 0 : index
    %135 = vector.load %arg9[%c0_43, %c0_44] : memref<128x256xbf16, #tpu.memory_space<vmem>>, vector<128x256xbf16>
    %cst_45 = arith.constant dense<0.000000e+00> : vector<8x256xf32>
    %136 = tpu.matmul %134, %135, %cst_45 {dimension_numbers = #tpu.dot_dimension_numbers<[1], [0], [0], [1], [0, 0, 1, 1], [], []>} : vector<8x128xbf16>, vector<128x256xbf16>, vector<8x256xf32> -> vector<8x256xf32>
    %c0_46 = arith.constant 0 : index
    %c0_47 = arith.constant 0 : index
    %137 = vector.load %arg10[%c0_46, %c0_47] : memref<1x256xf32, #tpu.memory_space<vmem>>, vector<1x256xf32>
    %138 = vector.broadcast %137 : vector<1x256xf32> to vector<8x256xf32>
    %139 = arith.addf %136, %138 : vector<8x256xf32>
    %cst_48 = arith.constant 0.000000e+00 : f32
    %140 = vector.broadcast %cst_48 : f32 to vector<8x256xf32>
    %141 = arith.maximumf %139, %140 : vector<8x256xf32>
    %142 = arith.truncf %141 : vector<8x256xf32> to vector<8x256xbf16>
    %c0_49 = arith.constant 0 : index
    %c0_50 = arith.constant 0 : index
    %143 = vector.load %arg11[%c0_49, %c0_50] : memref<256x128xbf16, #tpu.memory_space<vmem>>, vector<256x128xbf16>
    %cst_51 = arith.constant dense<0.000000e+00> : vector<8x128xf32>
    %144 = tpu.matmul %142, %143, %cst_51 {dimension_numbers = #tpu.dot_dimension_numbers<[1], [0], [0], [1], [0, 0, 1, 1], [], []>} : vector<8x256xbf16>, vector<256x128xbf16>, vector<8x128xf32> -> vector<8x128xf32>
    %c0_52 = arith.constant 0 : index
    %c0_53 = arith.constant 0 : index
    %145 = vector.load %arg12[%c0_52, %c0_53] : memref<1x128xf32, #tpu.memory_space<vmem>>, vector<1x128xf32>
    %146 = vector.broadcast %145 : vector<1x128xf32> to vector<8x128xf32>
    %147 = arith.addf %144, %146 : vector<8x128xf32>
    %148 = arith.addf %147, %133 : vector<8x128xf32>
    %c0_54 = arith.constant 0 : index
    %c0_55 = arith.constant 0 : index
    %149 = vector.load %arg13[%c0_54, %c0_55] : memref<1x128xf32, #tpu.memory_space<vmem>>, vector<1x128xf32>
    %c0_56 = arith.constant 0 : index
    %c0_57 = arith.constant 0 : index
    %150 = vector.load %arg14[%c0_56, %c0_57] : memref<1x128xf32, #tpu.memory_space<vmem>>, vector<1x128xf32>
    %cst_58 = arith.constant dense<0.000000e+00> : vector<8xf32>
    %151 = vector.multi_reduction <add>, %148, %cst_58 [1] : vector<8x128xf32> to vector<8xf32>
    %152 = vector.shape_cast %151 : vector<8xf32> to vector<8x1xf32>
    %cst_59 = arith.constant 1.280000e+02 : f32
    %153 = vector.broadcast %cst_59 : f32 to vector<8x1xf32>
    %154 = arith.divf %152, %153 : vector<8x1xf32>
    %155 = vector.broadcast %154 : vector<8x1xf32> to vector<8x128xf32>
    %156 = arith.subf %148, %155 : vector<8x128xf32>
    %157 = arith.mulf %156, %156 : vector<8x128xf32>
    %cst_60 = arith.constant dense<0.000000e+00> : vector<8xf32>
    %158 = vector.multi_reduction <add>, %157, %cst_60 [1] : vector<8x128xf32> to vector<8xf32>
    %159 = vector.shape_cast %158 : vector<8xf32> to vector<8x1xf32>
    %cst_61 = arith.constant 1.280000e+02 : f32
    %160 = vector.broadcast %cst_61 : f32 to vector<8x1xf32>
    %161 = arith.divf %159, %160 : vector<8x1xf32>
    %cst_62 = arith.constant 9.99999974E-6 : f32
    %162 = vector.broadcast %cst_62 : f32 to vector<8x1xf32>
    %163 = arith.addf %161, %162 : vector<8x1xf32>
    %164 = math.rsqrt %163 : vector<8x1xf32>
    %165 = vector.broadcast %164 : vector<8x1xf32> to vector<8x128xf32>
    %166 = arith.mulf %156, %165 : vector<8x128xf32>
    %167 = vector.broadcast %149 : vector<1x128xf32> to vector<8x128xf32>
    %168 = arith.mulf %166, %167 : vector<8x128xf32>
    %169 = vector.broadcast %150 : vector<1x128xf32> to vector<8x128xf32>
    %170 = arith.addf %168, %169 : vector<8x128xf32>
    %c0_63 = arith.constant 0 : index
    %c0_64 = arith.constant 0 : index
    %171 = vector.load %arg15[%c0_63, %c0_64] : memref<8x128xf32, #tpu.memory_space<vmem>>, vector<8x128xf32>
    tpu.vector_store %arg15[%c0_63, %c0_64], %170 {strides = array<i32>} : memref<8x128xf32, #tpu.memory_space<vmem>>, vector<8x128xf32>,
    return
  }
  func.func @transform_0(%arg0: i32, %arg1: memref<2xi32, #tpu.memory_space<smem>>) -> (i32, i32) {
    %c0_i32 = arith.constant 0 : i32
    %c0_i32_0 = arith.constant 0 : i32
    return %arg0, %c0_i32 : i32, i32
  }
  func.func @transform_1(%arg0: i32, %arg1: memref<2xi32, #tpu.memory_space<smem>>) -> (i32, i32) {
    %c0_i32 = arith.constant 0 : i32
    %c0_i32_0 = arith.constant 0 : i32
    %c0_i32_1 = arith.constant 0 : i32
    return %c0_i32, %c0_i32_0 : i32, i32
  }
  func.func @transform_2(%arg0: i32, %arg1: memref<2xi32, #tpu.memory_space<smem>>) -> (i32, i32) {
    %c0_i32 = arith.constant 0 : i32
    %c0_i32_0 = arith.constant 0 : i32
    %c0_i32_1 = arith.constant 0 : i32
    return %c0_i32, %c0_i32_0 : i32, i32
  }
  func.func @transform_3(%arg0: i32, %arg1: memref<2xi32, #tpu.memory_space<smem>>) -> (i32, i32) {
    %c0_i32 = arith.constant 0 : i32
    %c0_i32_0 = arith.constant 0 : i32
    %c0_i32_1 = arith.constant 0 : i32
    return %c0_i32, %c0_i32_0 : i32, i32
  }
  func.func @transform_4(%arg0: i32, %arg1: memref<2xi32, #tpu.memory_space<smem>>) -> (i32, i32) {
    %c0_i32 = arith.constant 0 : i32
    %c0_i32_0 = arith.constant 0 : i32
    %c0_i32_1 = arith.constant 0 : i32
    return %c0_i32, %c0_i32_0 : i32, i32
  }
  func.func @transform_5(%arg0: i32, %arg1: memref<2xi32, #tpu.memory_space<smem>>) -> (i32, i32) {
    %c0_i32 = arith.constant 0 : i32
    %c0_i32_0 = arith.constant 0 : i32
    %c0_i32_1 = arith.constant 0 : i32
    return %c0_i32, %c0_i32_0 : i32, i32
  }
  func.func @transform_6(%arg0: i32, %arg1: memref<2xi32, #tpu.memory_space<smem>>) -> (i32, i32) {
    %c0_i32 = arith.constant 0 : i32
    %c0_i32_0 = arith.constant 0 : i32
    %c0_i32_1 = arith.constant 0 : i32
    return %c0_i32, %c0_i32_0 : i32, i32
  }
  func.func @transform_7(%arg0: i32, %arg1: memref<2xi32, #tpu.memory_space<smem>>) -> (i32, i32) {
    %c0_i32 = arith.constant 0 : i32
    %c0_i32_0 = arith.constant 0 : i32
    %c0_i32_1 = arith.constant 0 : i32
    return %c0_i32, %c0_i32_0 : i32, i32
  }
  func.func @transform_8(%arg0: i32, %arg1: memref<2xi32, #tpu.memory_space<smem>>) -> (i32, i32) {
    %c0_i32 = arith.constant 0 : i32
    %c0_i32_0 = arith.constant 0 : i32
    %c0_i32_1 = arith.constant 0 : i32
    return %c0_i32, %c0_i32_0 : i32, i32
  }
  func.func @transform_9(%arg0: i32, %arg1: memref<2xi32, #tpu.memory_space<smem>>) -> (i32, i32) {
    %c0_i32 = arith.constant 0 : i32
    %c0_i32_0 = arith.constant 0 : i32
    %c0_i32_1 = arith.constant 0 : i32
    return %c0_i32, %c0_i32_0 : i32, i32
  }
  func.func @transform_10(%arg0: i32, %arg1: memref<2xi32, #tpu.memory_space<smem>>) -> (i32, i32) {
    %c0_i32 = arith.constant 0 : i32
    %c0_i32_0 = arith.constant 0 : i32
    %c0_i32_1 = arith.constant 0 : i32
    return %c0_i32, %c0_i32_0 : i32, i32
  }
  func.func @transform_11(%arg0: i32, %arg1: memref<2xi32, #tpu.memory_space<smem>>) -> (i32, i32) {
    %c0_i32 = arith.constant 0 : i32
    %c0_i32_0 = arith.constant 0 : i32
    %c0_i32_1 = arith.constant 0 : i32
    return %c0_i32, %c0_i32_0 : i32, i32
  }
  func.func @transform_12(%arg0: i32, %arg1: memref<2xi32, #tpu.memory_space<smem>>) -> (i32, i32) {
    %c0_i32 = arith.constant 0 : i32
    %c0_i32_0 = arith.constant 0 : i32
    %c0_i32_1 = arith.constant 0 : i32
    return %c0_i32, %c0_i32_0 : i32, i32
  }
  func.func @transform_13(%arg0: i32, %arg1: memref<2xi32, #tpu.memory_space<smem>>) -> (i32, i32) {
    %c0_i32 = arith.constant 0 : i32
    %c0_i32_0 = arith.constant 0 : i32
    return %arg0, %c0_i32 : i32, i32
  }
}

</mosaic_0001>

<bundles_post_ra>
// kernel: bert_encoder_forward.2
= control target key start
LH: loop header
LB: loop body
LE: loop exit
PB: predicated region body
PF: predicated region fallthrough
CT: control target
= control target key end

     0   :  { %s1886_s16 = smov [#allocation3]   ;;  %s2369_s0 = inlined_call_operand.vmem [shape: s32[2], index: 0, kind: input, shape index: {}]   ;;  %s2370_s1 = inlined_call_operand.vmem [shape: f32[16,128], index: 1, kind: input, shape index: {}]   ;;  %s2371_s2 = inlined_call_operand.vmem [shape: bf16[128,384], index: 2, kind: input, shape index: {}]   ;;  %s2372_s3 = inlined_call_operand.vmem [shape: f32[1,384], index: 3, kind: input, shape index: {}]   ;;  %s2373_s4 = inlined_call_operand.vmem [shape: bf16[128,128], index: 4, kind: input, shape index: {}]   ;;  %s2374_s5 = inlined_call_operand.vmem [shape: f32[1,128], index: 5, kind: input, shape index: {}]   ;;  %s2375_s6 = inlined_call_operand.vmem [shape: f32[1,128], index: 6, kind: input, shape index: {}]   ;;  %s2376_s7 = inlined_call_operand.vmem [shape: f32[1,128], index: 7, kind: input, shape index: {}]   ;;  %s2377_s8 = inlined_call_operand.vmem [shape: bf16[128,256], index: 8, kind: input, shape index: {}]   ;;  %s2378_s9 = inlined_call_operand.vmem [shape: f32[1,256], index: 9, kind: input, shape index: {}]   ;;  %s2379_s10 = inlined_call_operand.hbm [shape: bf16[256,128], index: 10, kind: input, shape index: {}]   ;;  %s2380_s11 = inlined_call_operand.vmem [shape: f32[1,128], index: 11, kind: input, shape index: {}]   ;;  %s2381_s12 = inlined_call_operand.vmem [shape: f32[1,128], index: 12, kind: input, shape index: {}]   ;;  %s2382_s13 = inlined_call_operand.vmem [shape: f32[1,128], index: 13, kind: input, shape index: {}]   ;;  %s2383_s14 = inlined_call_operand.vmem [shape: f32[16,128], index: 14, kind: output, shape index: {}]  }
   0x1   :  { %s20_s15 = sshll.u32 %s2369_s0, 4  ;;  %s21_s15 = int_to_ptr.vmem [resolvable:$true] %s20_s15 }
   0x2   :  { %23 = dma.vmem_to_smem %s21_s15, 16, %s1886_s16, [#allocation2] }
   0x3   :  { %1876 = dma.done.wait [#allocation2], 16 }
   0x4   :  { %1877 = vsyncadd [#allocation2], 4294967280 }
   0x5   :  { %26 = sfence }
   0x6   :  { %27 = vsyncpa [#allocation5], 0  ;;  %s1972_s17 = smov 0  }
   0x7 LB: > { %s377_s0 = sshll.u32 %s2379_s10, 4  ;;  %s1981_s20 = sadd.s32 4294967295, %s1884_s17   ;;  %s1884_s17 = sphi %s1972_s17, %s33_s17   ;;  %s378_s0 = int_to_ptr.hbm [resolvable:$true] %s377_s0 }
   0x8   : > { %p1439_p0 = scmp.ge.s32.totalorder %s1884_s17, 1  ;;  %p342_p1 = scmp.lt.s32.totalorder %s1884_s17, 3 }
   0x9   : > { %p1784_p2 = scmp.eq.s32.totalorder %s1981_s20, 0  ;;  %s1887_s21 = smov [#allocation4]  }
   0xa   : > { %p343_p3 = pnand %p1439_p0, %p342_p1  ;;  %s379_s22 = sshll.u32 %s1887_s21, 4  ;;  %s380_s22 = int_to_ptr.vmem [resolvable:$true] %s379_s22 }
   0xb   : > { %s1888_s23 = smov 64   ;;  %s1889_s24 = smov 4  }
   0xc   : > { %p1780_p4 = pneg %p343_p3  ;;  %411 = sbr.rel (%p343_p3) target bundleno = 2202 (0x89a), region = 72 }
   0xe   : > { %p1781_p5 = pnand %p1784_p2, %p1780_p4 }
  0x10   : > { %1783 = dma.hbm_to_vmem [thread:$0]  (!%p1781_p5), %s378_s0, 2048, %s380_s22, [#allocation5], %s1888_s23, %s1888_s23, %s1889_s24  }
  0x11   : > { %1879 = dma.done.wait (%p1784_p2), [#allocation5], 2048  }
  0x12   : > { %1881 = vsyncadd (%p1784_p2), [#allocation5], 4294965248  ;;  %v1532_v0 = vld [vmem:[%s2371_s2 + $0xa8] sm:$0xf]  ;;  %v1734_v1 = vld [vmem:[%s2371_s2 + $0xb0] sm:$0xf0] }
  0x13   : > { %v1733_v2 = vld [vmem:[%s2371_s2 + $0xac] sm:$0xf]  ;;  %v1533_v3 = vor.u32 %v1734_v1, %v1532_v0  ;;  %v1534_v4 = vld [vmem:[%s2371_s2 + $0xb4] sm:$0xf0]  ;;  %v1520_v5 = vld [vmem:[%s2371_s2 + $0x90] sm:$0xf] }
  0x14   : > { %v1731_v6 = vld [vmem:[%s2371_s2 + $0x98] sm:$0xf0]  ;;  %v1537_v7 = vor.u32 %v1733_v2, %v1534_v4  ;;  %v1730_v8 = vld [vmem:[%s2371_s2 + $0x94] sm:$0xf]  ;;  %v1522_v9 = vld [vmem:[%s2371_s2 + $0x9c] sm:$0xf0] }
  0x15   : > { %633 = vmatpush.bf16.msra.mxu0 %v1533_v3  ;;  %v1521_v10 = vor.u32 %v1731_v6, %v1520_v5  ;;  %v1525_v11 = vor.u32 %v1730_v8, %v1522_v9  ;;  %v1508_v12 = vld [vmem:[%s2371_s2 + $0x78] sm:$0xf]  ;;  %v1728_v13 = vld [vmem:[%s2371_s2 + $0x80] sm:$0xf0]  ;;  %v1727_v14 = vld [vmem:[%s2371_s2 + $0x7c] sm:$0xf] }
  0x16   : > { %646 = vmatpush.bf16.msra.mxu1 %v1537_v7  ;;  %v1510_v15 = vld [vmem:[%s2371_s2 + $0x84] sm:$0xf0]  ;;  %v1509_v16 = vor.u32 %v1728_v13, %v1508_v12  ;;  %v1496_v18 = vld [vmem:[%s2371_s2 + $0x60] sm:$0xf]  ;;  %v1725_v19 = vld [vmem:[%s2371_s2 + $0x68] sm:$0xf0] }
  0x17   : > { %v1513_v17 = vor.u32 %v1727_v14, %v1510_v15  ;;  %v1724_v20 = vld [vmem:[%s2371_s2 + $0x64] sm:$0xf]  ;;  %v1498_v21 = vld [vmem:[%s2371_s2 + $0x6c] sm:$0xf0]  ;;  %p454_p6 = scmp.lt.s32.totalorder %s1981_s20, 1  ;;  %v1497_v22 = vor.u32 %v1725_v19, %v1496_v18  ;;  %vm680_vm0 = vcmask 261120  }
  0x18   : > { %v1540_v23 = vld [vmem:[%s2371_s2 + $0xb0] sm:$0xf]  ;;  %v1735_v24 = vld [vmem:[%s2371_s2 + $0xb8] sm:$0xf0]  ;;  %v1528_v25 = vld [vmem:[%s2371_s2 + $0x98] sm:$0xf]  ;;  %v1501_v26 = vor.u32 %v1724_v20, %v1498_v21 }
  0x19   : > { %634 = vmatpush.bf16.msra.mxu0 %v1521_v10  ;;  %v1484_v27 = vld [vmem:[%s2371_s2 + $0x48] sm:$0xf]  ;;  %v1722_v28 = vld [vmem:[%s2371_s2 + $0x50] sm:$0xf0]  ;;  %v1541_v29 = vor.u32 %v1735_v24, %v1540_v23  ;;  %v1732_v30 = vld [vmem:[%s2371_s2 + $0xa0] sm:$0xf0] }
  0x1a   : > { %647 = vmatpush.bf16.msra.mxu1 %v1525_v11  ;;  %v1721_v31 = vld [vmem:[%s2371_s2 + $0x4c] sm:$0xf]  ;;  %v1486_v32 = vld [vmem:[%s2371_s2 + $0x54] sm:$0xf0]  ;;  %s2062_s28 = scalar_select %p454_p6, %s1981_s20, 1  ;;  %v1529_v33 = vor.u32 %v1732_v30, %v1528_v25  ;;  %v1485_v34 = vor.u32 %v1722_v28, %v1484_v27  ;;  %vm718_vm1 = vcmask 1043456  }
  0x1b   : > { %659 = vmatpush.bf16.msra.mxu2 %v1541_v29  ;;  %v1472_v35 = vld [vmem:[%s2371_s2 + $0x30] sm:$0xf]  ;;  %v1516_v36 = vld [vmem:[%s2371_s2 + $0x80] sm:$0xf]  ;;  %v1729_v37 = vld [vmem:[%s2371_s2 + $0x88] sm:$0xf0]  ;;  %v1489_v38 = vor.u32 %v1721_v31, %v1486_v32  ;;  %v673_v32 = vlaneseq }
  0x1c   : > { %v1719_v39 = vld [vmem:[%s2371_s2 + $0x38] sm:$0xf0]  ;;  %v1718_v40 = vld [vmem:[%s2371_s2 + $0x34] sm:$0xf]  ;;  %v1474_v41 = vld [vmem:[%s2371_s2 + $0x3c] sm:$0xf0]  ;;  %v1517_v42 = vor.u32 %v1729_v37, %v1516_v36 }
  0x1d   : > { %635 = vmatpush.bf16.msra.mxu0 %v1509_v16  ;;  %v1473_v43 = vor.u32 %v1719_v39, %v1472_v35  ;;  %v1504_v44 = vld [vmem:[%s2371_s2 + $0x68] sm:$0xf]  ;;  %v1726_v45 = vld [vmem:[%s2371_s2 + $0x70] sm:$0xf0]  ;;  %v1477_v46 = vor.u32 %v1718_v40, %v1474_v41  ;;  %v1460_v47 = vld [vmem:[%s2371_s2 + $0x18] sm:$0xf] }
  0x1e   : > { %648 = vmatpush.bf16.msra.mxu1 %v1513_v17  ;;  %v1716_v48 = vld [vmem:[%s2371_s2 + $0x20] sm:$0xf0]  ;;  %v1715_v49 = vld [vmem:[%s2371_s2 + $0x1c] sm:$0xf]  ;;  %v1462_v50 = vld [vmem:[%s2371_s2 + $0x24] sm:$0xf0]  ;;  %v1505_v51 = vor.u32 %v1726_v45, %v1504_v44 }
  0x1f   : > { %660 = vmatpush.bf16.msra.mxu2 %v1529_v33  ;;  %s1444_s24 = sshll.u32 %s2062_s28, 3  ;;  %v1461_v52 = vor.u32 %v1716_v48, %v1460_v47  ;;  %v1492_v53 = vld [vmem:[%s2371_s2 + $0x50] sm:$0xf]  ;;  %v1723_v54 = vld [vmem:[%s2371_s2 + $0x58] sm:$0xf0]  ;;  %v1465_v55 = vor.u32 %v1715_v49, %v1462_v50  ;;  %s1890_s29 = smov 64  }
  0x20   : > { %v1448_v56 = vld [vmem:[%s2371_s2] sm:$0xf]  ;;  %v1713_v57 = vld [vmem:[%s2371_s2 + $0x8] sm:$0xf0]  ;;  %s457_s21 = scalar_lea.vmem %s2370_s1, %s1444_s24  ;;  %v1712_v58 = vld [vmem:[%s2371_s2 + $0x4] sm:$0xf]  ;;  %v1493_v60 = vor.u32 %v1723_v54, %v1492_v53 }
  0x21   : > { %636 = vmatpush.bf16.msra.mxu0 %v1497_v22  ;;  %v1450_v59 = vld [vmem:[%s2371_s2 + $0xc] sm:$0xf0]  ;;  %v1449_v61 = vor.u32 %v1713_v57, %v1448_v56  ;;  %v2124_v62 = vld [vmem:[%s457_s21] sm:$0xff]  ;;  %v1480_v63 = vld [vmem:[%s2371_s2 + $0x38] sm:$0xf]  ;;  %s1891_s30 = smov 96  }
  0x22   : > { %649 = vmatpush.bf16.msra.mxu1 %v1501_v26  ;;  %v1720_v0 = vld [vmem:[%s2371_s2 + $0x40] sm:$0xf0]  ;;  %v1453_v1 = vor.u32 %v1712_v58, %v1450_v59  ;;  %v464_v2 = vpack.c.bf16 %v2124_v62, %v2124_v62  ;;  %v1468_v4 = vld [vmem:[%s2371_s2 + $0x20] sm:$0xf]  ;;  %v1717_v5 = vld [vmem:[%s2371_s2 + $0x28] sm:$0xf0] }
  0x23   : > { %661 = vmatpush.bf16.msra.mxu2 %v1517_v42  ;;  %v1481_v3 = vor.u32 %v1720_v0, %v1480_v63  ;;  %v1469_v6 = vor.u32 %v1717_v5, %v1468_v4  ;;  %v1456_v7 = vld [vmem:[%s2371_s2 + $0x8] sm:$0xf]  ;;  %v1714_v8 = vld [vmem:[%s2371_s2 + $0x10] sm:$0xf0]  ;;  %v497_v10 = vld [vmem:[%s2372_s3] sm:$0x7] }
  0x24   : > { %v1457_v9 = vor.u32 %v1714_v8, %v1456_v7  ;;  %v500_v11 = vperm.slane %v497_v10, 1  ;;  %v499_v14 = vperm.slane %v497_v10, 0  ;;  %s1892_s15 = smov 32   ;;  %v501_v23 = vperm.slane %v497_v10, 2  ;;  %s672_s16 = sld [smem:[#allocation3 + %s1981_s20]] }
  0x25   : > { %637 = vmatpush.bf16.msra.mxu0 %v1485_v34  ;;  %v674_v33 = vand.u32 127, %v673_v32  ;;  %vm702_vm3 = vcmask 64512   ;;  %vm925_vm4 = vcmask 523264   ;;  %vm927_vm5 = vcmask 785408  }
  0x26   : > { %650 = vmatpush.bf16.msra.mxu1 %v1489_v38 }
  0x27   : > { %662 = vmatpush.bf16.msra.mxu2 %v1505_v51 }
  0x29   : > { %638 = vmatpush.bf16.msra.mxu0 %v1473_v43 }
  0x2a   : > { %651 = vmatpush.bf16.msra.mxu1 %v1477_v46  ;;  %v675_v34 = vstv %s672_s16 }
  0x2b   : > { %663 = vmatpush.bf16.msra.mxu2 %v1493_v60  ;;  %vm2163_vm2 = vcmp.lt.s32.totalorder %v674_v33, %v675_v34 }
  0x2d   : > { %639 = vmatpush.bf16.msra.mxu0 %v1461_v52 }
  0x2e   : > { %652 = vmatpush.bf16.msra.mxu1 %v1465_v55 }
  0x2f   : > { %664 = vmatpush.bf16.msra.mxu2 %v1481_v3 }
  0x31   : > { %640 = vmatpush.bf16.msra.mxu0 %v1449_v61 }
  0x32   : > { %653 = vmatpush.bf16.msra.mxu1 %v1453_v1 }
  0x33   : > { %665 = vmatpush.bf16.msra.mxu2 %v1469_v6 }
  0x34   : > { %641 = vmatmul.bf16.vlgmr.msra.gmra.mxu0 %v464_v2 }
  0x35   : > { %654 = vmatmul.bf16.vlgmr.msra.gmra.mxu1 %v464_v2 }
  0x37   : > { %666 = vmatpush.bf16.msra.mxu2 %v1457_v9 }
  0x3a   : > { %667 = vmatmul.bf16.vlgmr.msra.gmra.mxu2 %v464_v2 }
  0xb1   : > { %v642_v12 = vpop.f32.mrf.mxu0 }
  0xb2   : > { %v655_v13 = vpop.f32.mrf.mxu1  ;;  %v643_v17 = vadd.f32 %v642_v12, %v499_v14 }
  0xb3   : > { %v656_v15 = vadd.f32 %v655_v13, %v500_v11 }
  0xb4   : > { %v677_v21 = vpack.c.bf16 %v643_v17, %v643_v17 }
  0xb5   : > { %v678_v16 = vpack.c.bf16 %v656_v15, %v656_v15 }
  0xb7   : > { %798 = vrot.lane.b32.xlu2 %v678_v16, %s1890_s29  ;;  %739 = vrot.lane.b32.xlu1 %v678_v16, %s1891_s30  ;;  %v685_v18 = vsel %vm680_vm0, %v678_v16, 0 }
  0xb8   : > { %694 = vmatpush.bf16.xpose.msra.mxu3 %v685_v18 }
  0xb9   : > { %v644_v19 = vpop.f32.mrf.mxu0 }
  0xba   : > { %v657_v20 = vpop.f32.mrf.mxu1 }
  0xbd   : > { %v668_v22 = vpop.f32.mrf.mxu2 }
  0xbe   : > { %v669_v24 = vadd.f32 %v668_v22, %v501_v23 }
  0xbf   : > { %856 = vrot.lane.b32.xlu2 %v678_v16, %s1892_s15  ;;  %736 = vrot.lane.b32.xlu1 %v677_v21, %s1891_s30 }
  0xc0   : > { %1542 = vmatmul.msk.bf16.vlgmr.msra.gmra.mxu3 %vm680_vm0, %v677_v21  ;;  %v2156_v26 = vpack.c.bf16 %v669_v24, %v669_v24 }
  0xc2   : > { %v720_v27 = vsel %vm718_vm1, %v2156_v26, 0 }
  0xc3   : > { %729 = vmatpush.bf16.msrb.mxu3 %v720_v27 }
  0xc5   : > { %v670_v25 = vpop.f32.mrf.mxu2 }
  0xc7   : > { %854 = vrot.lane.b32.xlu1 %v677_v21, %s1892_s15 }
 0x111   : > { %v799_v28 = vpop.permute.xlu2 %798 }
 0x112   : > { %v804_v29 = vsel %vm680_vm0, %v799_v28, 0 }
 0x113   : > { %813 = vmatpush.bf16.xpose.msrb.mxu2 %v804_v29 }
 0x119   : > { %v857_v49 = vpop.permute.xlu2 %856 }
 0x11a   : > { %v862_v51 = vsel %vm680_vm0, %v857_v49, 0  ;;  %v1742_v49 = vld [vmem:[%s2373_s4 + $0x30] sm:$0xff] }
 0x129   : > { %v740_v30 = vpop.permute.xlu1 %739 }
 0x12a   : > { %v745_v31 = vsel %vm680_vm0, %v740_v30, 0 }
 0x12b   : > { %754 = vmatpush.bf16.xpose.msra.mxu3 %v745_v31 }
 0x131   : > { %v737_v53 = vpop.permute.xlu1 %736 }
 0x139   : > { %v855_v54 = vpop.permute.xlu1 %854 }
 0x143   : > { %v696_v35 = vpop.f32.mrf.mxu3 }
 0x144   : > { %v700_v37 = vmul.f32 0.17677669, %v696_v35 }
 0x146   : > { %v701_v38 = vsel %vm2163_vm2, %v700_v37, -1000000.0 }
 0x147   : > { %v703_v39 = vsel %vm702_vm3, %v701_v38, -inf }
 0x148   : > { %704 = vmax.xlane.f32.xlu0 %v703_v39 }
 0x14b   : > { %v698_v40 = vpop.f32.mrf.mxu3 }
 0x1bb   : > { %v705_v41 = vpop.xlane.xlu0 %704 }
 0x1bc   : > { %v706_v42 = vsub.f32 %v701_v38, %v705_v41 }
 0x1be   : > { %v707_v43 = vmul.f32 1.442695, %v706_v42 }
 0x1c0   : > { %1808 = vpow2.f32 %v707_v43 }
 0x1c6   : > { %v1809_v44 = vpop.eup %1808 }
 0x1c7   : > { %v709_v45 = vsel %vm702_vm3, %v1809_v44, 0.0 }
 0x1c8   : > { %710 = vadd.xlane.f32.xlu0 %v709_v45 }
 0x1dc   : > { %796 = vrot.lane.b32.xlu0 %v677_v21, %s1890_s29 }
 0x23b   : > { %v711_v46 = vpop.xlane.xlu0 %710 }
 0x23c   : > { %1810 = vrcp.f32 %v711_v46 }
 0x242   : > { %v1811_v47 = vpop.eup %1810 }
 0x243   : > { %v713_v48 = vmul.f32 %v1811_v47, %v1809_v44 }
 0x245   : > { %v714_v50 = vpack.c.bf16 %v713_v48, %v713_v48  ;;  %v1743_v48 = vld [vmem:[%s2373_s4 + $0x38] sm:$0xff] }
 0x246   : > { %998 = vmatpush.bf16.msrb.mxu1 %v1743_v48 }
 0x247   : > { %1543 = vmatmul.msk.bf16.vlgmr.msrb.gmra.mxu3 %vm702_vm3, %v714_v50  ;;  %v1741_v50 = vld [vmem:[%s2373_s4 + $0x28] sm:$0xff] }
 0x248   : > { %871 = vmatpush.bf16.xpose.msrb.mxu3 %v862_v51  ;;  %v1740_v51 = vld [vmem:[%s2373_s4 + $0x20] sm:$0xff] }
 0x24a   : > { %999 = vmatpush.bf16.msrb.mxu1 %v1742_v49  ;;  %v1602_v49 = vld [vmem:[%s2377_s8 + $0x28] sm:$0xf0] }
 0x24e   : > { %v797_v52 = vpop.permute.xlu0 %796  ;;  %1000 = vmatpush.bf16.msrb.mxu1 %v1741_v50 }
 0x24f   : > { %1546 = vmatmul.msk.bf16.vlgmr.msrb.gmra.mxu2 %vm680_vm0, %v797_v52  ;;  %v1739_v52 = vld [vmem:[%s2373_s4 + $0x18] sm:$0xff] }
 0x252   : > { %1001 = vmatpush.bf16.msrb.mxu1 %v1740_v51  ;;  %v1592_v51 = vld [vmem:[%s2377_s8 + $0x10] sm:$0xf] }
 0x256   : > { %1002 = vmatpush.bf16.msrb.mxu1 %v1739_v52  ;;  %v1747_v52 = vld [vmem:[%s2377_s8 + $0x14] sm:$0xf0] }
 0x257   : > { %1544 = vmatmul.msk.bf16.vlgmr.msra.gmra.mxu3 %vm680_vm0, %v737_v53  ;;  %v1738_v53 = vld [vmem:[%s2373_s4 + $0x10] sm:$0xff] }
 0x25a   : > { %1003 = vmatpush.bf16.msrb.mxu1 %v1738_v53  ;;  %v1746_v53 = vld [vmem:[%s2377_s8 + $0x14] sm:$0xf] }
 0x267   : > { %1548 = vmatmul.msk.bf16.vlgmr.msrb.gmra.mxu3 %vm680_vm0, %v855_v54  ;;  %v1737_v54 = vld [vmem:[%s2373_s4 + $0x8] sm:$0xff] }
 0x268   : > { %1004 = vmatpush.bf16.msrb.mxu1 %v1737_v54  ;;  %v1593_v54 = vor.u32 %v1747_v52, %v1592_v51 }
 0x2ca   : > { %v2177_v55 = vpop.f32.mrf.mxu3 }
 0x2d2   : > { %v733_v56 = vpop.f32.mrf.mxu3  ;;  %v815_v57 = vpop.f32.mrf.mxu2 }
 0x2d3   : > { %v819_v58 = vmul.f32 0.17677669, %v815_v57  ;;  %v1736_v56 = vld [vmem:[%s2373_s4] sm:$0xff] }
 0x2d4   : > { %1005 = vmatpush.bf16.msrb.mxu1 %v1736_v56  ;;  %v1594_v56 = vld [vmem:[%s2377_s8 + $0x18] sm:$0xf0] }
 0x2d5   : > { %v820_v59 = vsel %vm2163_vm2, %v819_v58, -1000000.0 }
 0x2d6   : > { %v821_v60 = vsel %vm702_vm3, %v820_v59, -inf }
 0x2d7   : > { %822 = vmax.xlane.f32.xlu1 %v821_v60 }
 0x2da   : > { %v756_v61 = vpop.f32.mrf.mxu3  ;;  %v817_v63 = vpop.f32.mrf.mxu2 }
 0x2db   : > { %v760_v0 = vmul.f32 0.17677669, %v756_v61 }
 0x2dd   : > { %v761_v1 = vsel %vm2163_vm2, %v760_v0, -1000000.0 }
 0x2de   : > { %v762_v2 = vsel %vm702_vm3, %v761_v1, -inf }
 0x2df   : > { %763 = vmax.xlane.f32.xlu2 %v762_v2 }
 0x2e2   : > { %v758_v3 = vpop.f32.mrf.mxu3 }
 0x2ea   : > { %v873_v4 = vpop.f32.mrf.mxu3 }
 0x2eb   : > { %v877_v5 = vmul.f32 0.17677669, %v873_v4 }
 0x2ed   : > { %v878_v6 = vsel %vm2163_vm2, %v877_v5, -1000000.0 }
 0x2ee   : > { %v879_v7 = vsel %vm702_vm3, %v878_v6, -inf }
 0x2ef   : > { %880 = vmax.xlane.f32.xlu0 %v879_v7  ;;  %v1759_v7 = vld [vmem:[%s2377_s8 + $0x74] sm:$0xf0] }
 0x2f2   : > { %v875_v8 = vpop.f32.mrf.mxu3 }
 0x2f3   : > { %v1758_v8 = vld [vmem:[%s2377_s8 + $0x74] sm:$0xf] }
 0x303   : > { %833 = vrot.lane.b32.xlu0 %v2156_v26, %s1890_s29 }
 0x34a   : > { %v823_v9 = vpop.xlane.xlu1 %822 }
 0x34b   : > { %v824_v10 = vsub.f32 %v820_v59, %v823_v9 }
 0x34d   : > { %v825_v11 = vmul.f32 1.442695, %v824_v10 }
 0x34f   : > { %1812 = vpow2.f32 %v825_v11 }
 0x352   : > { %v764_v12 = vpop.xlane.xlu2 %763 }
 0x353   : > { %v765_v13 = vsub.f32 %v761_v1, %v764_v12  ;;  %v1802_v1 = vld [vmem:[%s2374_s5] ss:$0 sm:$0xff] }
 0x355   : > { %v1813_v14 = vpop.eup %1812  ;;  %v766_v15 = vmul.f32 1.442695, %v765_v13 }
 0x356   : > { %v827_v16 = vsel %vm702_vm3, %v1813_v14, 0.0 }
 0x357   : > { %1814 = vpow2.f32 %v766_v15  ;;  %828 = vadd.xlane.f32.xlu1 %v827_v16 }
 0x35d   : > { %v1815_v17 = vpop.eup %1814 }
 0x35e   : > { %v768_v18 = vsel %vm702_vm3, %v1815_v17, 0.0 }
 0x35f   : > { %769 = vadd.xlane.f32.xlu2 %v768_v18 }
 0x362   : > { %v881_v19 = vpop.xlane.xlu0 %880 }
 0x363   : > { %v882_v20 = vsub.f32 %v878_v6, %v881_v19  ;;  %v1893_v6 = vmov 128.0  }
 0x365   : > { %v883_v21 = vmul.f32 1.442695, %v882_v20 }
 0x367   : > { %1816 = vpow2.f32 %v883_v21  ;;  %v1632_v21 = vld [vmem:[%s2377_s8 + $0x60] sm:$0xf] }
 0x36d   : > { %v1817_v22 = vpop.eup %1816 }
 0x36e   : > { %v885_v23 = vsel %vm702_vm3, %v1817_v22, 0.0 }
 0x36f   : > { %886 = vadd.xlane.f32.xlu1 %v885_v23  ;;  %v1756_v23 = vld [vmem:[%s2377_s8 + $0x64] sm:$0xf] }
 0x375   : > { %v834_v24 = vpop.permute.xlu0 %833 }
 0x376   : > { %v839_v25 = vsel %vm718_vm1, %v834_v24, 0 }
 0x377   : > { %775 = vrot.lane.b32.xlu2 %v2156_v26, %s1891_s30  ;;  %848 = vmatpush.bf16.msra.mxu2 %v839_v25  ;;  %v1634_v25 = vld [vmem:[%s2377_s8 + $0x68] sm:$0xf0] }
 0x388   : > { %891 = vrot.lane.b32.xlu1 %v2156_v26, %s1892_s15 }
 0x3ca   : > { %v829_v27 = vpop.xlane.xlu1 %828 }
 0x3cb   : > { %1818 = vrcp.f32 %v829_v27  ;;  %v1637_v27 = vor.u32 %v1756_v23, %v1634_v25  ;;  %v1804_v25 = vld [vmem:[%s2376_s7] ss:$0 sm:$0xff] }
 0x3d1   : > { %v1819_v28 = vpop.eup %1818 }
 0x3d2   : > { %v831_v29 = vmul.f32 %v1819_v28, %v1813_v14  ;;  %v770_v30 = vpop.xlane.xlu2 %769  ;;  %v1624_v28 = vld [vmem:[%s2377_s8 + $0x50] sm:$0xf] }
 0x3d3   : > { %1820 = vrcp.f32 %v770_v30  ;;  %v1754_v30 = vld [vmem:[%s2377_s8 + $0x54] sm:$0xf] }
 0x3d4   : > { %v832_v31 = vpack.c.bf16 %v831_v29, %v831_v29  ;;  %v1755_v29 = vld [vmem:[%s2377_s8 + $0x54] sm:$0xf0] }
 0x3d6   : > { %1547 = vmatmul.msk.bf16.vlgmr.msra.gmra.mxu2 %vm702_vm3, %v832_v31  ;;  %v1625_v31 = vor.u32 %v1755_v29, %v1624_v28 }
 0x3d9   : > { %v1821_v32 = vpop.eup %1820 }
 0x3da   : > { %v772_v33 = vmul.f32 %v1821_v32, %v1815_v17  ;;  %v776_v34 = vpop.permute.xlu2 %775  ;;  %v1626_v32 = vld [vmem:[%s2377_s8 + $0x58] sm:$0xf0] }
 0x3db   : > { %v781_v35 = vsel %vm718_vm1, %v776_v34, 0  ;;  %v1616_v34 = vld [vmem:[%s2377_s8 + $0x40] sm:$0xf] }
 0x3dc   : > { %790 = vmatpush.bf16.msrb.mxu0 %v781_v35  ;;  %v773_v36 = vpack.c.bf16 %v772_v33, %v772_v33  ;;  %v1629_v33 = vor.u32 %v1754_v30, %v1626_v32  ;;  %v1753_v35 = vld [vmem:[%s2377_s8 + $0x44] sm:$0xf0]  ;;  %v1760_v32 = vld [vmem:[#allocation4] sm:$0xff] }
 0x3dd   : > { %v1761_v30 = vld [vmem:[#allocation4 + $0x8] sm:$0xff] }
 0x3df   : > { %1545 = vmatmul.msk.bf16.vlgmr.msrb.gmra.mxu0 %vm702_vm3, %v773_v36  ;;  %v1752_v36 = vld [vmem:[%s2377_s8 + $0x44] sm:$0xf] }
 0x3e2   : > { %v887_v37 = vpop.xlane.xlu1 %886 }
 0x3e3   : > { %1822 = vrcp.f32 %v887_v37  ;;  %v1617_v37 = vor.u32 %v1753_v35, %v1616_v34 }
 0x3e4   : > { %1824 = vrcp.f32 %v1893_v6  ;;  %v1774_v6 = vld [vmem:[#allocation4 + $0x70] sm:$0xff] }
 0x3e9   : > { %v1823_v26 = vpop.eup %1822 }
 0x3ea   : > { %v889_v38 = vmul.f32 %v1823_v26, %v1817_v22  ;;  %v1825_v11 = vpop.eup %1824  ;;  %v1757_v22 = vld [vmem:[%s2377_s8 + $0x64] sm:$0xf0]  ;;  %v1618_v26 = vld [vmem:[%s2377_s8 + $0x48] sm:$0xf0] }
 0x3eb   : > { %v1017_v12 = vmul.f32 128.0, %v1825_v11  ;;  %vm1021_vm6 = vweird.f32 %v1825_v11  ;;  %v1633_v24 = vor.u32 %v1757_v22, %v1632_v21  ;;  %v1803_v22 = vld [vmem:[%s2375_s6] ss:$0 sm:$0xff] }
 0x3ec   : > { %v890_v41 = vpack.c.bf16 %v889_v38, %v889_v38  ;;  %v1621_v38 = vor.u32 %v1752_v36, %v1618_v26 }
 0x3ed   : > { %v1018_v13 = vsub.f32 1.0, %v1017_v12  ;;  %v1763_v12 = vld [vmem:[#allocation4 + $0x18] sm:$0xff] }
 0x3ef   : > { %v1019_v14 = vmul.f32 %v1825_v11, %v1018_v13  ;;  %v1771_v13 = vld [vmem:[#allocation4 + $0x58] sm:$0xff] }
 0x3f1   : > { %v1020_v15 = vadd.f32 %v1825_v11, %v1019_v14 }
 0x3f3   : > { %v2248_v16 = vsel %vm1021_vm6, %v1825_v11, %v1020_v15 }
 0x3fa   : > { %v892_v39 = vpop.permute.xlu1 %891 }
 0x3fb   : > { %v897_v40 = vsel %vm718_vm1, %v892_v39, 0  ;;  %v1608_v39 = vld [vmem:[%s2377_s8 + $0x30] sm:$0xf] }
 0x3fc   : > { %906 = vmatpush.bf16.msra.mxu0 %v897_v40  ;;  %v1751_v40 = vld [vmem:[%s2377_s8 + $0x34] sm:$0xf0] }
 0x3ff   : > { %1549 = vmatmul.msk.bf16.vlgmr.msra.gmra.mxu0 %vm702_vm3, %v890_v41  ;;  %v1750_v41 = vld [vmem:[%s2377_s8 + $0x34] sm:$0xf] }
 0x459   : > { %v850_v42 = vpop.f32.mrf.mxu2 }
 0x45c   : > { %v792_v43 = vpop.f32.mrf.mxu0 }
 0x45d   : > { %913 = vrot.lane.b32.xlu2 %v792_v43, %s1892_s15  ;;  %v1610_v43 = vld [vmem:[%s2377_s8 + $0x38] sm:$0xf0]  ;;  %s461_s15 = scalar_lea.vmem %s2383_s14, %s1444_s24 }
 0x461   : > { %v852_v44 = vpop.f32.mrf.mxu2 }
 0x462   : > { %v1613_v44 = vor.u32 %v1750_v41, %v1610_v43 }
 0x464   : > { %v794_v45 = vpop.f32.mrf.mxu0 }
 0x465   : > { %917 = vrot.lane.b32.xlu2 %v850_v42, %s1890_s29  ;;  %v1609_v42 = vor.u32 %v1751_v40, %v1608_v39  ;;  %v1600_v45 = vld [vmem:[%s2377_s8 + $0x20] sm:$0xf] }
 0x47c   : > { %v908_v46 = vpop.f32.mrf.mxu0 }
 0x47d   : > { %921 = vrot.lane.b32.xlu0 %v908_v46, %s1891_s30  ;;  %v1749_v46 = vld [vmem:[%s2377_s8 + $0x24] sm:$0xf0] }
 0x47e   : > { %v1601_v48 = vor.u32 %v1749_v46, %v1600_v45  ;;  %v1805_v45 = vld [vmem:[%s2380_s11] ss:$0 sm:$0xff] }
 0x484   : > { %v910_v47 = vpop.f32.mrf.mxu0 }
 0x485   : > { %v1748_v47 = vld [vmem:[%s2377_s8 + $0x24] sm:$0xf] }
 0x486   : > { %v1605_v50 = vor.u32 %v1748_v47, %v1602_v49 }
 0x4b7   : > { %v914_v57 = vpop.permute.xlu2 %913 }
 0x4b8   : > { %v924_v59 = vsel %vm680_vm0, %v2177_v55, %v914_v57  ;;  %v1640_v55 = vld [vmem:[%s2377_s8 + $0x70] sm:$0xf]  ;;  %v1584_v57 = vld [vmem:[%s2377_s8] sm:$0xf] }
 0x4b9   : > { %v1641_v9 = vor.u32 %v1759_v7, %v1640_v55  ;;  %v1765_v7 = vld [vmem:[#allocation4 + $0x28] sm:$0xff] }
 0x4bb   : > { %1152 = vmatpush.bf16.msrb.mxu2 %v1641_v9  ;;  %v1764_v9 = vld [vmem:[#allocation4 + $0x20] sm:$0xff] }
 0x4bf   : > { %v918_v58 = vpop.permute.xlu2 %917  ;;  %1153 = vmatpush.bf16.msrb.mxu2 %v1633_v24 }
 0x4c0   : > { %v926_v60 = vsel %vm925_vm4, %v924_v59, %v918_v58  ;;  %v1745_v58 = vld [vmem:[%s2377_s8 + $0x4] sm:$0xf0]  ;;  %v1597_v59 = vor.u32 %v1746_v53, %v1594_v56 }
 0x4c3   : > { %1154 = vmatpush.bf16.msrb.mxu2 %v1625_v31  ;;  %v1769_v31 = vld [vmem:[#allocation4 + $0x48] sm:$0xff] }
 0x4c7   : > { %1155 = vmatpush.bf16.msrb.mxu2 %v1617_v37 }
 0x4cb   : > { %1156 = vmatpush.bf16.msrb.mxu2 %v1609_v42 }
 0x4cf   : > { %1157 = vmatpush.bf16.msrb.mxu2 %v1601_v48 }
 0x4d3   : > { %1158 = vmatpush.bf16.msrb.mxu2 %v1593_v54 }
 0x4ef   : > { %v922_v61 = vpop.permute.xlu0 %921 }
 0x4f0   : > { %v928_v63 = vsel %vm927_vm5, %v926_v60, %v922_v61  ;;  %v1744_v60 = vld [vmem:[%s2377_s8 + $0x4] sm:$0xf]  ;;  %v1586_v61 = vld [vmem:[%s2377_s8 + $0x8] sm:$0xf0] }
 0x4f1   : > { %v929_v0 = vpack.c.bf16 %v928_v63, %v928_v63  ;;  %v1585_v63 = vor.u32 %v1745_v58, %v1584_v57 }
 0x4f3   : > { %1006 = vmatmul.bf16.vlgmr.msrb.gmra.mxu1 %v929_v0  ;;  %v1589_v0 = vor.u32 %v1744_v60, %v1586_v61  ;;  %1159 = vmatpush.bf16.msrb.mxu2 %v1585_v63 }
 0x570   : > { %v1007_v2 = vpop.f32.mrf.mxu1 }
 0x571   : > { %v1008_v3 = vadd.f32 %v1802_v1, %v1007_v2  ;;  %v1767_v1 = vld [vmem:[#allocation4 + $0x38] sm:$0xff] }
 0x572   : > { %v1775_v2 = vld [vmem:[#allocation4 + $0x78] sm:$0xff]  ;;  %1314 = vmatpush.bf16.msrb.mxu0 %v1767_v1 }
 0x573   : > { %v1011_v4 = vadd.f32 %v1008_v3, %v2124_v62  ;;  %v1642_v62 = vld [vmem:[%s2377_s8 + $0x78] sm:$0xf0]  ;;  %1327 = vmatpush.bf16.msra.mxu1 %v1775_v2 }
 0x574   : > { %v1645_v10 = vor.u32 %v1758_v8, %v1642_v62  ;;  %v1773_v8 = vld [vmem:[#allocation4 + $0x68] sm:$0xff]  ;;  %v1772_v62 = vld [vmem:[#allocation4 + $0x60] sm:$0xff] }
 0x575   : > { %1014 = vadd.xlane.f32.xlu2 %v1011_v4 }
 0x576   : > { %1165 = vmatpush.bf16.msra.mxu3 %v1645_v10 }
 0x577   : > { %1328 = vmatpush.bf16.msra.mxu1 %v1774_v6 }
 0x578   : > { %v1009_v5 = vpop.f32.mrf.mxu1 }
 0x579   : > { %v1766_v5 = vld [vmem:[#allocation4 + $0x30] sm:$0xff] }
 0x57a   : > { %1166 = vmatpush.bf16.msra.mxu3 %v1637_v27  ;;  %1315 = vmatpush.bf16.msrb.mxu0 %v1766_v5 }
 0x57b   : > { %1329 = vmatpush.bf16.msra.mxu1 %v1773_v8 }
 0x57e   : > { %1167 = vmatpush.bf16.msra.mxu3 %v1629_v33  ;;  %1316 = vmatpush.bf16.msrb.mxu0 %v1765_v7  ;;  %v1768_v33 = vld [vmem:[#allocation4 + $0x40] sm:$0xff] }
 0x57f   : > { %1330 = vmatpush.bf16.msra.mxu1 %v1772_v62 }
 0x582   : > { %1168 = vmatpush.bf16.msra.mxu3 %v1621_v38  ;;  %1317 = vmatpush.bf16.msrb.mxu0 %v1764_v9 }
 0x583   : > { %1331 = vmatpush.bf16.msra.mxu1 %v1771_v13 }
 0x586   : > { %1169 = vmatpush.bf16.msra.mxu3 %v1613_v44  ;;  %1318 = vmatpush.bf16.msrb.mxu0 %v1763_v12 }
 0x58a   : > { %1170 = vmatpush.bf16.msra.mxu3 %v1605_v50 }
 0x58e   : > { %1171 = vmatpush.bf16.msra.mxu3 %v1597_v59 }
 0x592   : > { %1172 = vmatpush.bf16.msra.mxu3 %v1589_v0 }
 0x5e8   : > { %v1015_v17 = vpop.xlane.xlu2 %1014 }
 0x5e9   : > { %v1023_v18 = vmul.f32 %v2248_v16, %v1015_v17  ;;  %v1762_v17 = vld [vmem:[#allocation4 + $0x10] sm:$0xff] }
 0x5ea   : > { %1319 = vmatpush.bf16.msrb.mxu0 %v1762_v17 }
 0x5eb   : > { %v2251_v19 = vsub.f32 %v1011_v4, %v1023_v18  ;;  %v1770_v18 = vld [vmem:[#allocation4 + $0x50] sm:$0xff] }
 0x5ec   : > { %1332 = vmatpush.bf16.msra.mxu1 %v1770_v18 }
 0x5ed   : > { %v1025_v20 = vmul.f32 %v2251_v19, %v2251_v19 }
 0x5ee   : > { %1320 = vmatpush.bf16.msrb.mxu0 %v1761_v30 }
 0x5ef   : > { %1026 = vadd.xlane.f32.xlu0 %v1025_v20 }
 0x5f0   : > { %1333 = vmatpush.bf16.msra.mxu1 %v1769_v31 }
 0x5f2   : > { %1321 = vmatpush.bf16.msrb.mxu0 %v1760_v32 }
 0x5f4   : > { %1334 = vmatpush.bf16.msra.mxu1 %v1768_v33 }
 0x662   : > { %v1027_v3 = vpop.xlane.xlu0 %1026 }
 0x663   : > { %v1028_v4 = vmul.f32 %v1027_v3, %v2248_v16 }
 0x665   : > { %v1029_v55 = vadd.f32 1e-05, %v1028_v4  ;;  %v1806_v4 = vld [vmem:[%s2381_s12] ss:$0 sm:$0xff] }
 0x667   : > { %1826 = vrsqrt.f32 %v1029_v55  ;;  %vm1036_vm8 = vweird.f32 %v1029_v55 }
 0x66d   : > { %v1827_v10 = vpop.eup %1826 }
 0x66e   : > { %v1031_v11 = vmul.f32 %v1827_v10, %v1029_v55  ;;  %vm1037_vm7 = vweird.f32 %v1827_v10 }
 0x66f   : > { %vm1038_vm9 = vmor %vm1036_vm8, %vm1037_vm7 }
 0x670   : > { %v1032_v14 = vmul.f32 %v1827_v10, %v1031_v11 }
 0x672   : > { %v1033_v15 = vmul.f32 0.5, %v1032_v14 }
 0x674   : > { %v1034_v20 = vsub.f32 1.5, %v1033_v15 }
 0x676   : > { %v1035_v21 = vmul.f32 %v1827_v10, %v1034_v20 }
 0x678   : > { %v1039_v23 = vsel %vm1038_vm9, %v1827_v10, %v1035_v21 }
 0x679   : > { %v1040_v24 = vmul.f32 %v1039_v23, %v2251_v19  ;;  %v1066_v19 = vld [vmem:[%s2378_s9] sm:$0x3] }
 0x67a   : > { %v1068_v34 = vperm.slane %v1066_v19, 0  ;;  %v1069_v35 = vperm.slane %v1066_v19, 1 }
 0x67b   : > { %v1044_v27 = vmul.f32 %v1803_v22, %v1040_v24 }
 0x67d   : > { %v1048_v28 = vadd.f32 %v1804_v25, %v1044_v27 }
 0x67f   : > { %v1049_v29 = vpack.c.bf16 %v1048_v28, %v1048_v28 }
 0x681   : > { %1160 = vmatmul.bf16.vlgmr.msrb.gmra.mxu2 %v1049_v29  ;;  %1173 = vmatmul.bf16.vlgmr.msra.gmra.mxu3 %v1049_v29 }
 0x704   : > { %v1161_v36 = vpop.f32.mrf.mxu2  ;;  %v1174_v37 = vpop.f32.mrf.mxu3 }
 0x705   : > { %v1162_v26 = vadd.f32 %v1161_v36, %v1068_v34  ;;  %v1175_v38 = vadd.f32 %v1174_v37, %v1069_v35 }
 0x707   : > { %v1178_v39 = vmax.f32 %v1162_v26, 0.0  ;;  %v1179_v40 = vmax.f32 %v1175_v38, 0.0 }
 0x709   : > { %v1180_v41 = vpack.c.bf16 %v1178_v39, %v1178_v39  ;;  %v1181_v42 = vpack.c.bf16 %v1179_v40, %v1179_v40 }
 0x70b   : > { %1322 = vmatmul.bf16.vlgmr.msrb.gmra.mxu0 %v1180_v41  ;;  %1335 = vmatmul.bf16.vlgmr.msra.gmra.mxu1 %v1181_v42 }
 0x70c   : > { %v1163_v43 = vpop.f32.mrf.mxu2  ;;  %v1176_v44 = vpop.f32.mrf.mxu3 }
 0x788   : > { %v1323_v46 = vpop.f32.mrf.mxu0  ;;  %v1336_v47 = vpop.f32.mrf.mxu1 }
 0x789   : > { %v1324_v48 = vadd.f32 %v1805_v45, %v1323_v46 }
 0x78b   : > { %v1337_v49 = vadd.f32 %v1336_v47, %v1324_v48 }
 0x78d   : > { %v1340_v50 = vadd.f32 %v1337_v49, %v1048_v28 }
 0x78f   : > { %1343 = vadd.xlane.f32.xlu1 %v1340_v50 }
 0x790   : > { %v1325_v51 = vpop.f32.mrf.mxu0  ;;  %v1338_v52 = vpop.f32.mrf.mxu1 }
 0x802   : > { %v1344_v53 = vpop.xlane.xlu1 %1343 }
 0x803   : > { %v1345_v54 = vmul.f32 %v1344_v53, %v2248_v16 }
 0x805   : > { %v1346_v56 = vsub.f32 %v1340_v50, %v1345_v54 }
 0x807   : > { %v1347_v57 = vmul.f32 %v1346_v56, %v1346_v56 }
 0x809   : > { %1348 = vadd.xlane.f32.xlu2 %v1347_v57 }
 0x87c   : > { %v1349_v58 = vpop.xlane.xlu2 %1348 }
 0x87d   : > { %v1350_v59 = vmul.f32 %v1349_v58, %v2248_v16  ;;  %v1807_v16 = vld [vmem:[%s2382_s13] ss:$0 sm:$0xff] }
 0x87f   : > { %v1351_v60 = vadd.f32 1e-05, %v1350_v59 }
 0x881   : > { %1828 = vrsqrt.f32 %v1351_v60  ;;  %vm1358_vm11 = vweird.f32 %v1351_v60 }
 0x887   : > { %v1829_v61 = vpop.eup %1828 }
 0x888   : > { %v1353_v63 = vmul.f32 %v1829_v61, %v1351_v60  ;;  %vm1359_vm10 = vweird.f32 %v1829_v61 }
 0x889   : > { %vm1360_vm12 = vmor %vm1358_vm11, %vm1359_vm10 }
 0x88a   : > { %v1354_v0 = vmul.f32 %v1829_v61, %v1353_v63 }
 0x88c   : > { %v1355_v1 = vmul.f32 0.5, %v1354_v0 }
 0x88e   : > { %v1356_v2 = vsub.f32 1.5, %v1355_v1 }
 0x890   : > { %v1357_v3 = vmul.f32 %v1829_v61, %v1356_v2 }
 0x892   : > { %v1361_v5 = vsel %vm1360_vm12, %v1829_v61, %v1357_v3 }
 0x893   : > { %v1362_v6 = vmul.f32 %v1361_v5, %v1346_v56 }
 0x895   : > { %v1366_v55 = vmul.f32 %v1806_v4, %v1362_v6 }
 0x897   : > { %v1370_v7 = vadd.f32 %v1807_v16, %v1366_v55 }
 0x899   : > { %1371 = vst [vmem:[%s461_s15] sm:$0xff] %v1370_v7 }
 0x89a PF: > { %s33_s17 = sadd.s32 1, %s1884_s17  }
 0x89b   : > { %p30_p7 = scmp.ge.s32.totalorder %s33_s17, 4  }
 0x89d   :  { %32 = sbr.rel (!%p30_p7) target bundleno = 7 (0x7), region = 107 }
 0x8a2   :  { %1391 = vsyncpa [#allocation5], 1 }
 0x8a3   :  { %1393 = vsyncpa [#allocation5 + $0x1], 1 }

// kernel: bert_encoder_forward.3
= control target key start
LH: loop header
LB: loop body
LE: loop exit
PB: predicated region body
PF: predicated region fallthrough
CT: control target
= control target key end

     0   :  { %s2213_s16 = smov [#allocation3]   ;;  %s2542_s0 = inlined_call_operand.vmem [shape: s32[2], index: 0, kind: input, shape index: {}]   ;;  %s2543_s1 = inlined_call_operand.vmem [shape: f32[16,128], index: 1, kind: input, shape index: {}]   ;;  %s2544_s2 = inlined_call_operand.hbm [shape: bf16[128,384], index: 2, kind: input, shape index: {}]   ;;  %s2545_s3 = inlined_call_operand.vmem [shape: f32[1,384], index: 3, kind: input, shape index: {}]   ;;  %s2546_s4 = inlined_call_operand.hbm [shape: bf16[128,128], index: 4, kind: input, shape index: {}]   ;;  %s2547_s5 = inlined_call_operand.vmem [shape: f32[1,128], index: 5, kind: input, shape index: {}]   ;;  %s2548_s6 = inlined_call_operand.vmem [shape: f32[1,128], index: 6, kind: input, shape index: {}]   ;;  %s2549_s7 = inlined_call_operand.vmem [shape: f32[1,128], index: 7, kind: input, shape index: {}]   ;;  %s2550_s8 = inlined_call_operand.hbm [shape: bf16[128,256], index: 8, kind: input, shape index: {}]   ;;  %s2551_s9 = inlined_call_operand.vmem [shape: f32[1,256], index: 9, kind: input, shape index: {}]   ;;  %s2552_s10 = inlined_call_operand.hbm [shape: bf16[256,128], index: 10, kind: input, shape index: {}]   ;;  %s2553_s11 = inlined_call_operand.vmem [shape: f32[1,128], index: 11, kind: input, shape index: {}]   ;;  %s2554_s12 = inlined_call_operand.vmem [shape: f32[1,128], index: 12, kind: input, shape index: {}]   ;;  %s2555_s13 = inlined_call_operand.vmem [shape: f32[1,128], index: 13, kind: input, shape index: {}]   ;;  %s2556_s14 = inlined_call_operand.hbm [shape: f32[16,128], index: 14, kind: output, shape index: {}]  }
   0x1   :  { %2566 = sst [smem:[#allocation25_spill]] %s2544_s2  ;;  %s20_s15 = sshll.u32 %s2542_s0, 4  ;;  %s21_s15 = int_to_ptr.vmem [resolvable:$true] %s20_s15 }
   0x2   :  { %2567 = sst [smem:[#allocation26_spill]] %s2546_s4 }
   0x3   :  { %2568 = sst [smem:[#allocation27_spill]] %s2554_s12 }
   0x4   :  { %2569 = sst [smem:[#allocation28_spill]] %s2555_s13 }
   0x5   :  { %2570 = sst [smem:[#allocation29_spill]] %s2556_s14 }
   0x6   :  { %23 = dma.vmem_to_smem %s21_s15, 16, %s2213_s16, [#allocation2] }
   0x7   :  { %2179 = dma.done.wait [#allocation2], 16 }
   0x8   :  { %2180 = vsyncadd [#allocation2], 4294967280 }
   0x9   :  { %26 = sfence }
   0xa   :  { %27 = vsyncpa [#allocation5], 0 }
   0xb   :  { %28 = vsyncpa [#allocation8], 0 }
   0xc   :  { %29 = vsyncpa [#allocation11], 0 }
   0xd   :  { %30 = vsyncpa [#allocation6], 0 }
   0xe   :  { %32 = vsyncpa [#allocation6 + $0x1], 0  ;;  %s2306_s17 = smov 0   ;;  %s2308_s18 = smov 0  }
   0xf   :  { %s2310_s19 = smov 0   ;;  %s2312_s20 = smov 0  }
  0x10 LB: > { %2571 = sst [smem:[#allocation18_spill]] %s2199_s17  ;;  %s2327_s0 = sadd.s32 4294967295, %s2211_s20   ;;  %s2211_s20 = sphi %s2312_s20, %s2593_s20   ;;  %s2207_s19 = sphi %s2310_s19, %s2595_s19   ;;  %s2203_s18 = sphi %s2308_s18, %s2597_s18   ;;  %s2199_s17 = sphi %s2306_s17, %s2596_s17  }
  0x11   : > { %2572 = sst [smem:[#allocation19_spill]] %s2207_s19  ;;  %s1538_s21 = sadd.s32 4294967294, %s2211_s20  }
  0x12   : > { %2573 = sst [smem:[#allocation20_spill]] %s2211_s20  ;;  %s2331_s22 = sadd.s32 1, %s2211_s20  }
  0x13   : > { %2574 = sst [smem:[#allocation21_spill]] %s2331_s22  ;;  %s323_s23 = sadd.s32 1, %s2207_s19 }
  0x14   : > { %s320_s24 = ssub.s32 %s2211_s20, %s2331_s22  ;;  %p333_p0 = scmp.ne.s32.totalorder %s2207_s19, %s2203_s18 }
  0x15   : > { %p321_p1 = scmp.eq.s32.totalorder %s320_s24, 0  ;;  %p334_p2 = scmp.eq.s32.totalorder %s2327_s0, 1 }
  0x16   : > { %p339_p3 = scmp.ne.s32.totalorder %s2203_s18, %s2199_s17  ;;  %p340_p4 = scmp.eq.s32.totalorder %s1538_s21, 1 }
  0x17   : > { %s2342_s25 = scalar_select %p321_p1, %s2207_s19, %s323_s23  }
  0x18   : > { %p2344_p5 = por %p334_p2, %p333_p0  ;;  %p2348_p6 = por %p340_p4, %p339_p3 }
  0x19   : > { %2575 = sst [smem:[#allocation22_spill]] %s2342_s25  ;;  %p1539_p7 = scmp.ge.s32.totalorder %s2211_s20, 1 }
  0x1a   : > { %s2576_s26 = scalar_select %p2344_p5, 1, 0 }
  0x1b   : > { %s2578_s27 = scalar_select %p2348_p6, 1, 0 }
  0x1c   : > { %2577 = sst [smem:[#allocation23_spill]] %s2576_s26  ;;  %p347_p8 = scmp.lt.s32.totalorder %s2211_s20, 3 }
  0x1d   : > { %2579 = sst [smem:[#allocation24_spill]] %s2578_s27  ;;  %p1919_p9 = scmp.eq.s32.totalorder %s2327_s0, 0 }
  0x1e   : > { %p2355_p10 = pnand %p1539_p7, %p347_p8  ;;  %s2581_s4 = sld [smem:[#allocation26_spill]] }
  0x1f   : > { %s2214_s16 = smov [#allocation7]   ;;  %s2583_s2 = sld [smem:[#allocation25_spill]] }
  0x20   : > { %p1902_p11 = pneg %p2355_p10  ;;  %s377_s21 = sshll.u32 %s2214_s16, 4  ;;  %s378_s21 = int_to_ptr.vmem [resolvable:$true] %s377_s21 }
  0x21   : > { %s2215_s29 = smov 64   ;;  %s2216_s30 = smov 4  }
  0x22   : > { %p2366_p12 = pnand %p1919_p9, %p1902_p11  ;;  %s2218_s22 = smov 192  }
  0x23   : > { %s2219_s27 = smov 12   ;;  %s398_s25 = sshll.u32 %s2550_s8, 4  ;;  %s399_s25 = int_to_ptr.hbm [resolvable:$true] %s398_s25 }
  0x24   : > { %s375_s15 = sshll.u32 %s2581_s4, 4  ;;  %s2217_s4 = smov [#allocation4]   ;;  %s376_s15 = int_to_ptr.hbm [resolvable:$true] %s375_s15 }
  0x25   : > { %s358_s19 = sshll.u32 %s2583_s2, 4  ;;  %s360_s16 = sshll.u32 %s2217_s4, 4  ;;  %s359_s19 = int_to_ptr.hbm [resolvable:$true] %s358_s19  ;;  %s361_s16 = int_to_ptr.vmem [resolvable:$true] %s360_s16 }
  0x26   : > { %1908 = dma.hbm_to_vmem [thread:$0]  (!%p2366_p12), %s376_s15, 1024, %s378_s21, [#allocation8], %s2215_s29, %s2215_s29, %s2216_s30  }
  0x27   : > { %1905 = dma.hbm_to_vmem [thread:$0]  (!%p2366_p12), %s359_s19, 3072, %s361_s16, [#allocation5], %s2218_s22, %s2218_s22, %s2219_s27  }
  0x28   : > { %s2220_s24 = smov [#allocation9]   ;;  %s415_s15 = sshll.u32 %s2552_s10, 4  ;;  %s416_s15 = int_to_ptr.hbm [resolvable:$true] %s415_s15 }
  0x29   : > { %s400_s2 = sshll.u32 %s2220_s24, 4  ;;  %s2221_s21 = smov 128   ;;  %s401_s2 = int_to_ptr.vmem [resolvable:$true] %s400_s2 }
  0x2a   : > { %s2222_s4 = smov 8   ;;  %s2223_s14 = smov [#allocation10]  }
  0x2b   : > { %1911 = dma.hbm_to_vmem [thread:$0]  (!%p2366_p12), %s399_s25, 2048, %s401_s2, [#allocation8], %s2221_s21, %s2221_s21, %s2222_s4  }
  0x2c   : > { %s417_s12 = sshll.u32 %s2223_s14, 4  ;;  %449 = sbr.rel (%p2355_p10) target bundleno = 2240 (0x8c0), region = 72  ;;  %s418_s12 = int_to_ptr.vmem [resolvable:$true] %s417_s12 }
  0x2d   : > { %1914 = dma.hbm_to_vmem [thread:$0]  (!%p2366_p12), %s416_s15, 2048, %s418_s12, [#allocation11], %s2215_s29, %s2215_s29, %s2216_s30  }
  0x31   : > { %2182 = dma.done.wait (%p1919_p9), [#allocation5], 3072  }
  0x32   : > { %2184 = vsyncadd (%p1919_p9), [#allocation5], 4294964224 }
  0x33   : > { %2186 = dma.done.wait (%p1919_p9), [#allocation8], 3072  }
  0x34   : > { %2188 = vsyncadd (%p1919_p9), [#allocation8], 4294964224 }
  0x35   : > { %2190 = dma.done.wait (%p1919_p9), [#allocation11], 2048  }
  0x36   : > { %2192 = vsyncadd (%p1919_p9), [#allocation11], 4294965248  ;;  %v1638_v0 = vld [vmem:[#allocation4 + $0xa8] sm:$0xf]  ;;  %v1842_v1 = vld [vmem:[#allocation4 + $0xb0] sm:$0xf0] }
  0x37   : > { %v1841_v2 = vld [vmem:[#allocation4 + $0xac] sm:$0xf]  ;;  %v1639_v3 = vor.u32 %v1842_v1, %v1638_v0  ;;  %v1640_v4 = vld [vmem:[#allocation4 + $0xb4] sm:$0xf0]  ;;  %v1626_v5 = vld [vmem:[#allocation4 + $0x90] sm:$0xf] }
  0x38   : > { %v1839_v6 = vld [vmem:[#allocation4 + $0x98] sm:$0xf0]  ;;  %v1643_v7 = vor.u32 %v1841_v2, %v1640_v4  ;;  %v1838_v8 = vld [vmem:[#allocation4 + $0x94] sm:$0xf]  ;;  %v1628_v9 = vld [vmem:[#allocation4 + $0x9c] sm:$0xf0] }
  0x39   : > { %683 = vmatpush.bf16.msra.mxu0 %v1639_v3  ;;  %v1627_v10 = vor.u32 %v1839_v6, %v1626_v5  ;;  %v1631_v11 = vor.u32 %v1838_v8, %v1628_v9  ;;  %v1614_v12 = vld [vmem:[#allocation4 + $0x78] sm:$0xf]  ;;  %v1836_v13 = vld [vmem:[#allocation4 + $0x80] sm:$0xf0]  ;;  %v1835_v14 = vld [vmem:[#allocation4 + $0x7c] sm:$0xf] }
  0x3a   : > { %696 = vmatpush.bf16.msra.mxu1 %v1643_v7  ;;  %v1616_v15 = vld [vmem:[#allocation4 + $0x84] sm:$0xf0]  ;;  %v1615_v16 = vor.u32 %v1836_v13, %v1614_v12  ;;  %v1602_v18 = vld [vmem:[#allocation4 + $0x60] sm:$0xf]  ;;  %v1833_v19 = vld [vmem:[#allocation4 + $0x68] sm:$0xf0] }
  0x3b   : > { %v1619_v17 = vor.u32 %v1835_v14, %v1616_v15  ;;  %v1832_v20 = vld [vmem:[#allocation4 + $0x64] sm:$0xf]  ;;  %v1604_v21 = vld [vmem:[#allocation4 + $0x6c] sm:$0xf0]  ;;  %p508_p13 = scmp.lt.s32.totalorder %s2327_s0, 1  ;;  %v1603_v22 = vor.u32 %v1833_v19, %v1602_v18  ;;  %vm730_vm0 = vcmask 261120  }
  0x3c   : > { %v1646_v23 = vld [vmem:[#allocation4 + $0xb0] sm:$0xf]  ;;  %v1843_v24 = vld [vmem:[#allocation4 + $0xb8] sm:$0xf0]  ;;  %v1634_v25 = vld [vmem:[#allocation4 + $0x98] sm:$0xf]  ;;  %v1607_v26 = vor.u32 %v1832_v20, %v1604_v21 }
  0x3d   : > { %684 = vmatpush.bf16.msra.mxu0 %v1627_v10  ;;  %v1590_v27 = vld [vmem:[#allocation4 + $0x48] sm:$0xf]  ;;  %v1830_v28 = vld [vmem:[#allocation4 + $0x50] sm:$0xf0]  ;;  %v1647_v29 = vor.u32 %v1843_v24, %v1646_v23  ;;  %v1840_v30 = vld [vmem:[#allocation4 + $0xa0] sm:$0xf0] }
  0x3e   : > { %697 = vmatpush.bf16.msra.mxu1 %v1631_v11  ;;  %v1829_v31 = vld [vmem:[#allocation4 + $0x4c] sm:$0xf]  ;;  %v1592_v32 = vld [vmem:[#allocation4 + $0x54] sm:$0xf0]  ;;  %s2405_s2 = scalar_select %p508_p13, %s2327_s0, 1  ;;  %v1635_v33 = vor.u32 %v1840_v30, %v1634_v25  ;;  %v1591_v34 = vor.u32 %v1830_v28, %v1590_v27  ;;  %vm768_vm1 = vcmask 1043456  }
  0x3f   : > { %709 = vmatpush.bf16.msra.mxu2 %v1647_v29  ;;  %v1578_v35 = vld [vmem:[#allocation4 + $0x30] sm:$0xf]  ;;  %v1622_v36 = vld [vmem:[#allocation4 + $0x80] sm:$0xf]  ;;  %v1837_v37 = vld [vmem:[#allocation4 + $0x88] sm:$0xf0]  ;;  %v1595_v38 = vor.u32 %v1829_v31, %v1592_v32  ;;  %v723_v32 = vlaneseq }
  0x40   : > { %v1827_v39 = vld [vmem:[#allocation4 + $0x38] sm:$0xf0]  ;;  %v1826_v40 = vld [vmem:[#allocation4 + $0x34] sm:$0xf]  ;;  %v1580_v41 = vld [vmem:[#allocation4 + $0x3c] sm:$0xf0]  ;;  %v1623_v42 = vor.u32 %v1837_v37, %v1622_v36 }
  0x41   : > { %685 = vmatpush.bf16.msra.mxu0 %v1615_v16  ;;  %v1579_v43 = vor.u32 %v1827_v39, %v1578_v35  ;;  %v1610_v44 = vld [vmem:[#allocation4 + $0x68] sm:$0xf]  ;;  %v1834_v45 = vld [vmem:[#allocation4 + $0x70] sm:$0xf0]  ;;  %v1583_v46 = vor.u32 %v1826_v40, %v1580_v41  ;;  %v1566_v47 = vld [vmem:[#allocation4 + $0x18] sm:$0xf] }
  0x42   : > { %698 = vmatpush.bf16.msra.mxu1 %v1619_v17  ;;  %v1824_v48 = vld [vmem:[#allocation4 + $0x20] sm:$0xf0]  ;;  %v1823_v49 = vld [vmem:[#allocation4 + $0x1c] sm:$0xf]  ;;  %v1568_v50 = vld [vmem:[#allocation4 + $0x24] sm:$0xf0]  ;;  %v1611_v51 = vor.u32 %v1834_v45, %v1610_v44 }
  0x43   : > { %710 = vmatpush.bf16.msra.mxu2 %v1635_v33  ;;  %s1551_s12 = sshll.u32 %s2405_s2, 3  ;;  %v1567_v52 = vor.u32 %v1824_v48, %v1566_v47  ;;  %v1598_v53 = vld [vmem:[#allocation4 + $0x50] sm:$0xf]  ;;  %v1831_v54 = vld [vmem:[#allocation4 + $0x58] sm:$0xf0]  ;;  %v1571_v55 = vor.u32 %v1823_v49, %v1568_v50  ;;  %s2224_s22 = smov 64  }
  0x44   : > { %v1554_v56 = vld [vmem:[#allocation4] sm:$0xf]  ;;  %v1821_v57 = vld [vmem:[#allocation4 + $0x8] sm:$0xf0]  ;;  %s511_s17 = scalar_lea.vmem %s2543_s1, %s1551_s12  ;;  %v1820_v58 = vld [vmem:[#allocation4 + $0x4] sm:$0xf]  ;;  %v1599_v60 = vor.u32 %v1831_v54, %v1598_v53 }
  0x45   : > { %686 = vmatpush.bf16.msra.mxu0 %v1603_v22  ;;  %v1556_v59 = vld [vmem:[#allocation4 + $0xc] sm:$0xf0]  ;;  %v1555_v61 = vor.u32 %v1821_v57, %v1554_v56  ;;  %v2411_v62 = vld [vmem:[%s511_s17] sm:$0xff]  ;;  %v1586_v63 = vld [vmem:[#allocation4 + $0x38] sm:$0xf]  ;;  %s2225_s26 = smov 96  }
  0x46   : > { %699 = vmatpush.bf16.msra.mxu1 %v1607_v26  ;;  %v1828_v0 = vld [vmem:[#allocation4 + $0x40] sm:$0xf0]  ;;  %v1559_v1 = vor.u32 %v1820_v58, %v1556_v59  ;;  %v514_v2 = vpack.c.bf16 %v2411_v62, %v2411_v62  ;;  %v1574_v4 = vld [vmem:[#allocation4 + $0x20] sm:$0xf]  ;;  %v1825_v5 = vld [vmem:[#allocation4 + $0x28] sm:$0xf0] }
  0x47   : > { %711 = vmatpush.bf16.msra.mxu2 %v1623_v42  ;;  %v1587_v3 = vor.u32 %v1828_v0, %v1586_v63  ;;  %v1575_v6 = vor.u32 %v1825_v5, %v1574_v4  ;;  %v1562_v7 = vld [vmem:[#allocation4 + $0x8] sm:$0xf]  ;;  %v1822_v8 = vld [vmem:[#allocation4 + $0x10] sm:$0xf0]  ;;  %v547_v10 = vld [vmem:[%s2545_s3] sm:$0x7] }
  0x48   : > { %v1563_v9 = vor.u32 %v1822_v8, %v1562_v7  ;;  %v550_v11 = vperm.slane %v547_v10, 1  ;;  %v549_v14 = vperm.slane %v547_v10, 0  ;;  %s2226_s27 = smov 32   ;;  %v551_v23 = vperm.slane %v547_v10, 2  ;;  %s722_s28 = sld [smem:[#allocation3 + %s2327_s0]] }
  0x49   : > { %687 = vmatpush.bf16.msra.mxu0 %v1591_v34  ;;  %v724_v33 = vand.u32 127, %v723_v32  ;;  %vm752_vm3 = vcmask 64512   ;;  %vm975_vm4 = vcmask 523264   ;;  %vm977_vm5 = vcmask 785408   ;;  %s505_s12 = sand.u32 1, %s2203_s18   ;;  %s1817_s14 = sshll.u32 %s2327_s0, 3 }
  0x4a   : > { %700 = vmatpush.bf16.msra.mxu1 %v1595_v38  ;;  %s1550_s13 = sshll.u32 %s505_s12, 3  ;;  %s2586_s20 = sld [smem:[#allocation27_spill]] }
  0x4b   : > { %712 = vmatpush.bf16.msra.mxu2 %v1611_v51  ;;  %s2589_s16 = sld [smem:[#allocation28_spill]]  ;;  %s507_s25 = scalar_lea.vmem [#allocation12], %s1550_s13 }
  0x4c   : > { %s1435_s0 = sshll.u32 %s507_s25, 4  ;;  %s1423_s15 = scalar_lea.sflag [#allocation6], %s505_s12  ;;  %s1436_s0 = int_to_ptr.vmem [resolvable:$true] %s1435_s0 }
  0x4d   : > { %688 = vmatpush.bf16.msra.mxu0 %v1579_v43 }
  0x4e   : > { %701 = vmatpush.bf16.msra.mxu1 %v1583_v46  ;;  %v725_v34 = vstv %s722_s28 }
  0x4f   : > { %713 = vmatpush.bf16.msra.mxu2 %v1599_v60  ;;  %vm2432_vm2 = vcmp.lt.s32.totalorder %v724_v33, %v725_v34 }
  0x51   : > { %689 = vmatpush.bf16.msra.mxu0 %v1567_v52 }
  0x52   : > { %702 = vmatpush.bf16.msra.mxu1 %v1571_v55 }
  0x53   : > { %714 = vmatpush.bf16.msra.mxu2 %v1587_v3 }
  0x55   : > { %690 = vmatpush.bf16.msra.mxu0 %v1555_v61 }
  0x56   : > { %703 = vmatpush.bf16.msra.mxu1 %v1559_v1 }
  0x57   : > { %715 = vmatpush.bf16.msra.mxu2 %v1575_v6 }
  0x58   : > { %691 = vmatmul.bf16.vlgmr.msra.gmra.mxu0 %v514_v2 }
  0x59   : > { %704 = vmatmul.bf16.vlgmr.msra.gmra.mxu1 %v514_v2 }
  0x5b   : > { %716 = vmatpush.bf16.msra.mxu2 %v1563_v9 }
  0x5e   : > { %717 = vmatmul.bf16.vlgmr.msra.gmra.mxu2 %v514_v2 }
  0xd5   : > { %v692_v12 = vpop.f32.mrf.mxu0 }
  0xd6   : > { %v705_v13 = vpop.f32.mrf.mxu1  ;;  %v693_v17 = vadd.f32 %v692_v12, %v549_v14 }
  0xd7   : > { %v706_v15 = vadd.f32 %v705_v13, %v550_v11 }
  0xd8   : > { %v727_v21 = vpack.c.bf16 %v693_v17, %v693_v17 }
  0xd9   : > { %v728_v16 = vpack.c.bf16 %v706_v15, %v706_v15 }
  0xdb   : > { %848 = vrot.lane.b32.xlu2 %v728_v16, %s2224_s22  ;;  %789 = vrot.lane.b32.xlu1 %v728_v16, %s2225_s26  ;;  %v735_v18 = vsel %vm730_vm0, %v728_v16, 0 }
  0xdc   : > { %744 = vmatpush.bf16.xpose.msra.mxu3 %v735_v18 }
  0xdd   : > { %v694_v19 = vpop.f32.mrf.mxu0 }
  0xde   : > { %v707_v20 = vpop.f32.mrf.mxu1 }
  0xe1   : > { %v718_v22 = vpop.f32.mrf.mxu2 }
  0xe2   : > { %v719_v24 = vadd.f32 %v718_v22, %v551_v23 }
  0xe3   : > { %906 = vrot.lane.b32.xlu2 %v728_v16, %s2226_s27  ;;  %786 = vrot.lane.b32.xlu1 %v727_v21, %s2225_s26 }
  0xe4   : > { %1648 = vmatmul.msk.bf16.vlgmr.msra.gmra.mxu3 %vm730_vm0, %v727_v21  ;;  %v2425_v26 = vpack.c.bf16 %v719_v24, %v719_v24 }
  0xe6   : > { %v770_v27 = vsel %vm768_vm1, %v2425_v26, 0 }
  0xe7   : > { %779 = vmatpush.bf16.msrb.mxu3 %v770_v27 }
  0xe9   : > { %v720_v25 = vpop.f32.mrf.mxu2 }
  0xeb   : > { %904 = vrot.lane.b32.xlu1 %v727_v21, %s2226_s27 }
 0x135   : > { %v849_v28 = vpop.permute.xlu2 %848 }
 0x136   : > { %v854_v29 = vsel %vm730_vm0, %v849_v28, 0 }
 0x137   : > { %863 = vmatpush.bf16.xpose.msrb.mxu2 %v854_v29 }
 0x13d   : > { %v907_v49 = vpop.permute.xlu2 %906 }
 0x13e   : > { %v912_v51 = vsel %vm730_vm0, %v907_v49, 0  ;;  %v1850_v49 = vld [vmem:[#allocation7 + $0x30] sm:$0xff] }
 0x14d   : > { %v790_v30 = vpop.permute.xlu1 %789 }
 0x14e   : > { %v795_v31 = vsel %vm730_vm0, %v790_v30, 0 }
 0x14f   : > { %804 = vmatpush.bf16.xpose.msra.mxu3 %v795_v31 }
 0x155   : > { %v787_v53 = vpop.permute.xlu1 %786 }
 0x15d   : > { %v905_v54 = vpop.permute.xlu1 %904 }
 0x167   : > { %v746_v35 = vpop.f32.mrf.mxu3 }
 0x168   : > { %v750_v37 = vmul.f32 0.17677669, %v746_v35 }
 0x16a   : > { %v751_v38 = vsel %vm2432_vm2, %v750_v37, -1000000.0 }
 0x16b   : > { %v753_v39 = vsel %vm752_vm3, %v751_v38, -inf }
 0x16c   : > { %754 = vmax.xlane.f32.xlu0 %v753_v39 }
 0x16f   : > { %v748_v40 = vpop.f32.mrf.mxu3 }
 0x1df   : > { %v755_v41 = vpop.xlane.xlu0 %754 }
 0x1e0   : > { %v756_v42 = vsub.f32 %v751_v38, %v755_v41 }
 0x1e2   : > { %v757_v43 = vmul.f32 1.442695, %v756_v42 }
 0x1e4   : > { %1981 = vpow2.f32 %v757_v43 }
 0x1ea   : > { %v1982_v44 = vpop.eup %1981 }
 0x1eb   : > { %v759_v45 = vsel %vm752_vm3, %v1982_v44, 0.0 }
 0x1ec   : > { %760 = vadd.xlane.f32.xlu0 %v759_v45 }
 0x200   : > { %846 = vrot.lane.b32.xlu0 %v727_v21, %s2224_s22 }
 0x25f   : > { %v761_v46 = vpop.xlane.xlu0 %760 }
 0x260   : > { %1983 = vrcp.f32 %v761_v46 }
 0x266   : > { %v1984_v47 = vpop.eup %1983 }
 0x267   : > { %v763_v48 = vmul.f32 %v1984_v47, %v1982_v44 }
 0x269   : > { %v764_v50 = vpack.c.bf16 %v763_v48, %v763_v48  ;;  %v1851_v48 = vld [vmem:[#allocation7 + $0x38] sm:$0xff] }
 0x26a   : > { %1048 = vmatpush.bf16.msrb.mxu1 %v1851_v48 }
 0x26b   : > { %1649 = vmatmul.msk.bf16.vlgmr.msrb.gmra.mxu3 %vm752_vm3, %v764_v50  ;;  %v1849_v50 = vld [vmem:[#allocation7 + $0x28] sm:$0xff] }
 0x26c   : > { %921 = vmatpush.bf16.xpose.msrb.mxu3 %v912_v51  ;;  %v1848_v51 = vld [vmem:[#allocation7 + $0x20] sm:$0xff] }
 0x26e   : > { %1049 = vmatpush.bf16.msrb.mxu1 %v1850_v49  ;;  %v1708_v49 = vld [vmem:[#allocation9 + $0x28] sm:$0xf0] }
 0x272   : > { %v847_v52 = vpop.permute.xlu0 %846  ;;  %1050 = vmatpush.bf16.msrb.mxu1 %v1849_v50 }
 0x273   : > { %1652 = vmatmul.msk.bf16.vlgmr.msrb.gmra.mxu2 %vm730_vm0, %v847_v52  ;;  %v1847_v52 = vld [vmem:[#allocation7 + $0x18] sm:$0xff] }
 0x276   : > { %1051 = vmatpush.bf16.msrb.mxu1 %v1848_v51  ;;  %v1698_v51 = vld [vmem:[#allocation9 + $0x10] sm:$0xf] }
 0x27a   : > { %1052 = vmatpush.bf16.msrb.mxu1 %v1847_v52  ;;  %v1855_v52 = vld [vmem:[#allocation9 + $0x14] sm:$0xf0] }
 0x27b   : > { %1650 = vmatmul.msk.bf16.vlgmr.msra.gmra.mxu3 %vm730_vm0, %v787_v53  ;;  %v1846_v53 = vld [vmem:[#allocation7 + $0x10] sm:$0xff] }
 0x27e   : > { %1053 = vmatpush.bf16.msrb.mxu1 %v1846_v53  ;;  %v1854_v53 = vld [vmem:[#allocation9 + $0x14] sm:$0xf] }
 0x28b   : > { %1654 = vmatmul.msk.bf16.vlgmr.msrb.gmra.mxu3 %vm730_vm0, %v905_v54  ;;  %v1845_v54 = vld [vmem:[#allocation7 + $0x8] sm:$0xff] }
 0x28c   : > { %1054 = vmatpush.bf16.msrb.mxu1 %v1845_v54  ;;  %v1699_v54 = vor.u32 %v1855_v52, %v1698_v51 }
 0x2ee   : > { %v2446_v55 = vpop.f32.mrf.mxu3 }
 0x2f6   : > { %v783_v56 = vpop.f32.mrf.mxu3  ;;  %v865_v57 = vpop.f32.mrf.mxu2 }
 0x2f7   : > { %v869_v58 = vmul.f32 0.17677669, %v865_v57  ;;  %v1844_v56 = vld [vmem:[#allocation7] sm:$0xff] }
 0x2f8   : > { %1055 = vmatpush.bf16.msrb.mxu1 %v1844_v56  ;;  %v1700_v56 = vld [vmem:[#allocation9 + $0x18] sm:$0xf0] }
 0x2f9   : > { %v870_v59 = vsel %vm2432_vm2, %v869_v58, -1000000.0 }
 0x2fa   : > { %v871_v60 = vsel %vm752_vm3, %v870_v59, -inf }
 0x2fb   : > { %872 = vmax.xlane.f32.xlu1 %v871_v60 }
 0x2fe   : > { %v806_v61 = vpop.f32.mrf.mxu3  ;;  %v867_v63 = vpop.f32.mrf.mxu2 }
 0x2ff   : > { %v810_v0 = vmul.f32 0.17677669, %v806_v61 }
 0x301   : > { %v811_v1 = vsel %vm2432_vm2, %v810_v0, -1000000.0 }
 0x302   : > { %v812_v2 = vsel %vm752_vm3, %v811_v1, -inf }
 0x303   : > { %813 = vmax.xlane.f32.xlu2 %v812_v2 }
 0x306   : > { %v808_v3 = vpop.f32.mrf.mxu3 }
 0x30e   : > { %v923_v4 = vpop.f32.mrf.mxu3 }
 0x30f   : > { %v927_v5 = vmul.f32 0.17677669, %v923_v4 }
 0x311   : > { %v928_v6 = vsel %vm2432_vm2, %v927_v5, -1000000.0 }
 0x312   : > { %v929_v7 = vsel %vm752_vm3, %v928_v6, -inf }
 0x313   : > { %930 = vmax.xlane.f32.xlu0 %v929_v7  ;;  %v1746_v7 = vld [vmem:[#allocation9 + $0x70] sm:$0xf] }
 0x316   : > { %v925_v8 = vpop.f32.mrf.mxu3 }
 0x317   : > { %v1867_v8 = vld [vmem:[#allocation9 + $0x74] sm:$0xf0] }
 0x327   : > { %883 = vrot.lane.b32.xlu0 %v2425_v26, %s2224_s22 }
 0x36e   : > { %v873_v9 = vpop.xlane.xlu1 %872 }
 0x36f   : > { %v874_v10 = vsub.f32 %v870_v59, %v873_v9  ;;  %v1747_v9 = vor.u32 %v1867_v8, %v1746_v7  ;;  %v1873_v8 = vld [vmem:[#allocation10 + $0x28] sm:$0xff] }
 0x371   : > { %v875_v11 = vmul.f32 1.442695, %v874_v10  ;;  %v1748_v10 = vld [vmem:[#allocation9 + $0x78] sm:$0xf0] }
 0x373   : > { %1985 = vpow2.f32 %v875_v11 }
 0x376   : > { %v814_v12 = vpop.xlane.xlu2 %813 }
 0x377   : > { %v815_v13 = vsub.f32 %v811_v1, %v814_v12  ;;  %v1975_v1 = vld [vmem:[%s2547_s5] ss:$0 sm:$0xff] }
 0x379   : > { %v1986_v14 = vpop.eup %1985  ;;  %v816_v15 = vmul.f32 1.442695, %v815_v13 }
 0x37a   : > { %v877_v16 = vsel %vm752_vm3, %v1986_v14, 0.0 }
 0x37b   : > { %1987 = vpow2.f32 %v816_v15  ;;  %878 = vadd.xlane.f32.xlu1 %v877_v16 }
 0x381   : > { %v1988_v17 = vpop.eup %1987 }
 0x382   : > { %v818_v18 = vsel %vm752_vm3, %v1988_v17, 0.0 }
 0x383   : > { %819 = vadd.xlane.f32.xlu2 %v818_v18 }
 0x386   : > { %v931_v19 = vpop.xlane.xlu0 %930 }
 0x387   : > { %v932_v20 = vsub.f32 %v928_v6, %v931_v19  ;;  %v2227_v6 = vmov 128.0  }
 0x389   : > { %v933_v21 = vmul.f32 1.442695, %v932_v20 }
 0x38b   : > { %1989 = vpow2.f32 %v933_v21  ;;  %v1738_v21 = vld [vmem:[#allocation9 + $0x60] sm:$0xf] }
 0x391   : > { %v1990_v22 = vpop.eup %1989 }
 0x392   : > { %v935_v23 = vsel %vm752_vm3, %v1990_v22, 0.0 }
 0x393   : > { %936 = vadd.xlane.f32.xlu1 %v935_v23  ;;  %v1864_v23 = vld [vmem:[#allocation9 + $0x64] sm:$0xf] }
 0x399   : > { %v884_v24 = vpop.permute.xlu0 %883 }
 0x39a   : > { %v889_v25 = vsel %vm768_vm1, %v884_v24, 0 }
 0x39b   : > { %825 = vrot.lane.b32.xlu2 %v2425_v26, %s2225_s26  ;;  %898 = vmatpush.bf16.msra.mxu2 %v889_v25  ;;  %v1740_v25 = vld [vmem:[#allocation9 + $0x68] sm:$0xf0] }
 0x39f   : > { %1202 = vmatpush.bf16.msrb.mxu2 %v1747_v9  ;;  %v1872_v9 = vld [vmem:[#allocation10 + $0x20] sm:$0xff] }
 0x3ac   : > { %941 = vrot.lane.b32.xlu1 %v2425_v26, %s2226_s27 }
 0x3ee   : > { %v879_v27 = vpop.xlane.xlu1 %878 }
 0x3ef   : > { %1991 = vrcp.f32 %v879_v27  ;;  %v1743_v27 = vor.u32 %v1864_v23, %v1740_v25  ;;  %v1977_v25 = vld [vmem:[%s2549_s7] ss:$0 sm:$0xff] }
 0x3f5   : > { %v1992_v28 = vpop.eup %1991 }
 0x3f6   : > { %v881_v29 = vmul.f32 %v1992_v28, %v1986_v14  ;;  %v820_v30 = vpop.xlane.xlu2 %819  ;;  %v1730_v28 = vld [vmem:[#allocation9 + $0x50] sm:$0xf] }
 0x3f7   : > { %1993 = vrcp.f32 %v820_v30  ;;  %v1862_v30 = vld [vmem:[#allocation9 + $0x54] sm:$0xf] }
 0x3f8   : > { %v882_v31 = vpack.c.bf16 %v881_v29, %v881_v29  ;;  %v1863_v29 = vld [vmem:[#allocation9 + $0x54] sm:$0xf0] }
 0x3fa   : > { %1653 = vmatmul.msk.bf16.vlgmr.msra.gmra.mxu2 %vm752_vm3, %v882_v31  ;;  %v1731_v31 = vor.u32 %v1863_v29, %v1730_v28 }
 0x3fd   : > { %v1994_v32 = vpop.eup %1993 }
 0x3fe   : > { %v822_v33 = vmul.f32 %v1994_v32, %v1988_v17  ;;  %v826_v34 = vpop.permute.xlu2 %825  ;;  %v1732_v32 = vld [vmem:[#allocation9 + $0x58] sm:$0xf0] }
 0x3ff   : > { %v831_v35 = vsel %vm768_vm1, %v826_v34, 0  ;;  %v1722_v34 = vld [vmem:[#allocation9 + $0x40] sm:$0xf] }
 0x400   : > { %840 = vmatpush.bf16.msrb.mxu0 %v831_v35  ;;  %v823_v36 = vpack.c.bf16 %v822_v33, %v822_v33  ;;  %v1735_v33 = vor.u32 %v1862_v30, %v1732_v32  ;;  %v1861_v35 = vld [vmem:[#allocation9 + $0x44] sm:$0xf0]  ;;  %v1868_v32 = vld [vmem:[#allocation10] sm:$0xff] }
 0x401   : > { %v1869_v30 = vld [vmem:[#allocation10 + $0x8] sm:$0xff] }
 0x403   : > { %1651 = vmatmul.msk.bf16.vlgmr.msrb.gmra.mxu0 %vm752_vm3, %v823_v36  ;;  %v1860_v36 = vld [vmem:[#allocation9 + $0x44] sm:$0xf] }
 0x406   : > { %v937_v37 = vpop.xlane.xlu1 %936 }
 0x407   : > { %1995 = vrcp.f32 %v937_v37  ;;  %v1723_v37 = vor.u32 %v1861_v35, %v1722_v34 }
 0x408   : > { %1997 = vrcp.f32 %v2227_v6  ;;  %v1882_v6 = vld [vmem:[#allocation10 + $0x70] sm:$0xff] }
 0x40d   : > { %v1996_v26 = vpop.eup %1995 }
 0x40e   : > { %v939_v38 = vmul.f32 %v1996_v26, %v1990_v22  ;;  %v1998_v12 = vpop.eup %1997  ;;  %v1865_v22 = vld [vmem:[#allocation9 + $0x64] sm:$0xf0]  ;;  %v1724_v26 = vld [vmem:[#allocation9 + $0x48] sm:$0xf0] }
 0x40f   : > { %v1067_v13 = vmul.f32 128.0, %v1998_v12  ;;  %vm1071_vm6 = vweird.f32 %v1998_v12  ;;  %v1739_v24 = vor.u32 %v1865_v22, %v1738_v21  ;;  %v1976_v22 = vld [vmem:[%s2548_s6] ss:$0 sm:$0xff] }
 0x410   : > { %v940_v41 = vpack.c.bf16 %v939_v38, %v939_v38  ;;  %v1727_v38 = vor.u32 %v1860_v36, %v1724_v26 }
 0x411   : > { %v1068_v14 = vsub.f32 1.0, %v1067_v13  ;;  %1203 = vmatpush.bf16.msrb.mxu2 %v1739_v24  ;;  %v1871_v13 = vld [vmem:[#allocation10 + $0x18] sm:$0xff] }
 0x413   : > { %v1069_v15 = vmul.f32 %v1998_v12, %v1068_v14  ;;  %v1879_v14 = vld [vmem:[#allocation10 + $0x58] sm:$0xff] }
 0x415   : > { %v1070_v16 = vadd.f32 %v1998_v12, %v1069_v15  ;;  %1204 = vmatpush.bf16.msrb.mxu2 %v1731_v31  ;;  %v1877_v31 = vld [vmem:[#allocation10 + $0x48] sm:$0xff] }
 0x417   : > { %v2481_v17 = vsel %vm1071_vm6, %v1998_v12, %v1070_v16 }
 0x419   : > { %1205 = vmatpush.bf16.msrb.mxu2 %v1723_v37 }
 0x41e   : > { %v942_v39 = vpop.permute.xlu1 %941 }
 0x41f   : > { %v947_v40 = vsel %vm768_vm1, %v942_v39, 0  ;;  %v1714_v39 = vld [vmem:[#allocation9 + $0x30] sm:$0xf] }
 0x420   : > { %956 = vmatpush.bf16.msra.mxu0 %v947_v40  ;;  %v1859_v40 = vld [vmem:[#allocation9 + $0x34] sm:$0xf0] }
 0x423   : > { %1655 = vmatmul.msk.bf16.vlgmr.msra.gmra.mxu0 %vm752_vm3, %v940_v41  ;;  %v1858_v41 = vld [vmem:[#allocation9 + $0x34] sm:$0xf] }
 0x47d   : > { %v900_v42 = vpop.f32.mrf.mxu2 }
 0x480   : > { %v842_v43 = vpop.f32.mrf.mxu0 }
 0x481   : > { %963 = vrot.lane.b32.xlu2 %v842_v43, %s2226_s27  ;;  %v1716_v43 = vld [vmem:[#allocation9 + $0x38] sm:$0xf0]  ;;  %s2587_s27 = sld [smem:[#allocation29_spill]] }
 0x485   : > { %v902_v44 = vpop.f32.mrf.mxu2 }
 0x486   : > { %v1719_v44 = vor.u32 %v1858_v41, %v1716_v43 }
 0x487   : > { %s1433_s28 = scalar_lea.hbm %s2587_s27, %s1817_s14  ;;  %s2155_s17 = scalar_lea.hbm %s2587_s27, 16 }
 0x488   : > { %v844_v45 = vpop.f32.mrf.mxu0  ;;  %s1437_s24 = sshll.u32 %s1433_s28, 4  ;;  %s1438_s24 = int_to_ptr.hbm [resolvable:$true] %s1437_s24 }
 0x489   : > { %967 = vrot.lane.b32.xlu2 %v900_v42, %s2224_s22  ;;  %v1715_v42 = vor.u32 %v1859_v40, %v1714_v39  ;;  %v1706_v45 = vld [vmem:[#allocation9 + $0x20] sm:$0xf]  ;;  %s2149_s21 = sshra.s32 %s1438_s24, 4  ;;  %s2150_s21 = int_to_ptr.hbm [resolvable:$true] %s2149_s21 }
 0x48a   : > { %s2151_s4 = scalar_lea.hbm %s2150_s21, 8  ;;  %p2156_p3 = scmp.lt.s32.totalorder %s2150_s21, %s2587_s27 }
 0x48b   : > { %1206 = vmatpush.bf16.msrb.mxu2 %v1715_v42  ;;  %p2152_p0 = scmp.ne.s32.totalorder %s2150_s21, %s2151_s4  ;;  %p2157_p4 = scmp.lt.s32.totalorder %s2155_s17, %s2151_s4 }
 0x48d   : > { %p2153_p1 = pnand %p2152_p0, %p2344_p5  ;;  %p2158_p7 = por %p2157_p4, %p2156_p3 }
 0x48f   : > { %p2154_p2 = pneg %p2153_p1 }
 0x491   : > { %p2159_p8 = pnand %p2158_p7, %p2154_p2 }
 0x4a0   : > { %v958_v46 = vpop.f32.mrf.mxu0 }
 0x4a1   : > { %971 = vrot.lane.b32.xlu0 %v958_v46, %s2225_s26  ;;  %v1857_v46 = vld [vmem:[#allocation9 + $0x24] sm:$0xf0] }
 0x4a2   : > { %v1707_v48 = vor.u32 %v1857_v46, %v1706_v45  ;;  %v1978_v45 = vld [vmem:[%s2553_s11] ss:$0 sm:$0xff] }
 0x4a4   : > { %1207 = vmatpush.bf16.msrb.mxu2 %v1707_v48 }
 0x4a8   : > { %v960_v47 = vpop.f32.mrf.mxu0  ;;  %1208 = vmatpush.bf16.msrb.mxu2 %v1699_v54 }
 0x4a9   : > { %v1856_v47 = vld [vmem:[#allocation9 + $0x24] sm:$0xf] }
 0x4aa   : > { %v1711_v50 = vor.u32 %v1856_v47, %v1708_v49 }
 0x4db   : > { %v964_v57 = vpop.permute.xlu2 %963 }
 0x4dc   : > { %v974_v59 = vsel %vm730_vm0, %v2446_v55, %v964_v57  ;;  %v1866_v55 = vld [vmem:[#allocation9 + $0x74] sm:$0xf]  ;;  %v1690_v57 = vld [vmem:[#allocation9] sm:$0xf] }
 0x4dd   : > { %v1751_v11 = vor.u32 %v1866_v55, %v1748_v10  ;;  %v1881_v55 = vld [vmem:[#allocation10 + $0x68] sm:$0xff]  ;;  %v1880_v10 = vld [vmem:[#allocation10 + $0x60] sm:$0xff] }
 0x4df   : > { %1215 = vmatpush.bf16.msra.mxu3 %v1751_v11 }
 0x4e3   : > { %v968_v58 = vpop.permute.xlu2 %967  ;;  %1216 = vmatpush.bf16.msra.mxu3 %v1743_v27 }
 0x4e4   : > { %v976_v60 = vsel %vm975_vm4, %v974_v59, %v968_v58  ;;  %v1853_v58 = vld [vmem:[#allocation9 + $0x4] sm:$0xf0]  ;;  %v1703_v59 = vor.u32 %v1854_v53, %v1700_v56 }
 0x4e7   : > { %1217 = vmatpush.bf16.msra.mxu3 %v1735_v33  ;;  %v1876_v33 = vld [vmem:[#allocation10 + $0x40] sm:$0xff] }
 0x4eb   : > { %1218 = vmatpush.bf16.msra.mxu3 %v1727_v38 }
 0x4ef   : > { %1219 = vmatpush.bf16.msra.mxu3 %v1719_v44 }
 0x4f3   : > { %1220 = vmatpush.bf16.msra.mxu3 %v1711_v50 }
 0x4f7   : > { %1221 = vmatpush.bf16.msra.mxu3 %v1703_v59 }
 0x513   : > { %v972_v61 = vpop.permute.xlu0 %971 }
 0x514   : > { %v978_v63 = vsel %vm977_vm5, %v976_v60, %v972_v61  ;;  %v1852_v60 = vld [vmem:[#allocation9 + $0x4] sm:$0xf]  ;;  %v1692_v61 = vld [vmem:[#allocation9 + $0x8] sm:$0xf0] }
 0x515   : > { %v979_v0 = vpack.c.bf16 %v978_v63, %v978_v63  ;;  %v1691_v63 = vor.u32 %v1853_v58, %v1690_v57 }
 0x517   : > { %1056 = vmatmul.bf16.vlgmr.msrb.gmra.mxu1 %v979_v0  ;;  %v1695_v0 = vor.u32 %v1852_v60, %v1692_v61  ;;  %1209 = vmatpush.bf16.msrb.mxu2 %v1691_v63 }
 0x519   : > { %1222 = vmatpush.bf16.msra.mxu3 %v1695_v0 }
 0x594   : > { %v1057_v2 = vpop.f32.mrf.mxu1 }
 0x595   : > { %v1058_v3 = vadd.f32 %v1975_v1, %v1057_v2  ;;  %v1875_v1 = vld [vmem:[#allocation10 + $0x38] sm:$0xff] }
 0x596   : > { %v1883_v2 = vld [vmem:[#allocation10 + $0x78] sm:$0xff]  ;;  %1364 = vmatpush.bf16.msrb.mxu0 %v1875_v1 }
 0x597   : > { %v1061_v4 = vadd.f32 %v1058_v3, %v2411_v62  ;;  %1377 = vmatpush.bf16.msra.mxu1 %v1883_v2 }
 0x599   : > { %1064 = vadd.xlane.f32.xlu2 %v1061_v4 }
 0x59b   : > { %1378 = vmatpush.bf16.msra.mxu1 %v1882_v6  ;;  %v1980_v6 = vld [vmem:[%s2589_s16] ss:$0 sm:$0xff] }
 0x59c   : > { %v1059_v5 = vpop.f32.mrf.mxu1 }
 0x59d   : > { %v1874_v5 = vld [vmem:[#allocation10 + $0x30] sm:$0xff] }
 0x59e   : > { %1365 = vmatpush.bf16.msrb.mxu0 %v1874_v5 }
 0x59f   : > { %1379 = vmatpush.bf16.msra.mxu1 %v1881_v55 }
 0x5a2   : > { %1366 = vmatpush.bf16.msrb.mxu0 %v1873_v8 }
 0x5a3   : > { %1380 = vmatpush.bf16.msra.mxu1 %v1880_v10 }
 0x5a6   : > { %1367 = vmatpush.bf16.msrb.mxu0 %v1872_v9 }
 0x5a7   : > { %1381 = vmatpush.bf16.msra.mxu1 %v1879_v14 }
 0x5aa   : > { %1368 = vmatpush.bf16.msrb.mxu0 %v1871_v13 }
 0x60c   : > { %v1065_v62 = vpop.xlane.xlu2 %1064 }
 0x60d   : > { %v1073_v18 = vmul.f32 %v2481_v17, %v1065_v62  ;;  %v1870_v62 = vld [vmem:[#allocation10 + $0x10] sm:$0xff] }
 0x60e   : > { %1369 = vmatpush.bf16.msrb.mxu0 %v1870_v62 }
 0x60f   : > { %v2484_v19 = vsub.f32 %v1061_v4, %v1073_v18  ;;  %v1878_v18 = vld [vmem:[#allocation10 + $0x50] sm:$0xff] }
 0x610   : > { %1382 = vmatpush.bf16.msra.mxu1 %v1878_v18 }
 0x611   : > { %v1075_v20 = vmul.f32 %v2484_v19, %v2484_v19 }
 0x612   : > { %1370 = vmatpush.bf16.msrb.mxu0 %v1869_v30 }
 0x613   : > { %1076 = vadd.xlane.f32.xlu0 %v1075_v20 }
 0x614   : > { %1383 = vmatpush.bf16.msra.mxu1 %v1877_v31 }
 0x616   : > { %1371 = vmatpush.bf16.msrb.mxu0 %v1868_v32 }
 0x618   : > { %1384 = vmatpush.bf16.msra.mxu1 %v1876_v33 }
 0x686   : > { %v1077_v3 = vpop.xlane.xlu0 %1076 }
 0x687   : > { %v1078_v4 = vmul.f32 %v1077_v3, %v2481_v17 }
 0x689   : > { %v1079_v7 = vadd.f32 1e-05, %v1078_v4  ;;  %v1979_v4 = vld [vmem:[%s2586_s20] ss:$0 sm:$0xff] }
 0x68b   : > { %1999 = vrsqrt.f32 %v1079_v7  ;;  %vm1086_vm8 = vweird.f32 %v1079_v7 }
 0x691   : > { %v2000_v11 = vpop.eup %1999 }
 0x692   : > { %v1081_v12 = vmul.f32 %v2000_v11, %v1079_v7  ;;  %vm1087_vm7 = vweird.f32 %v2000_v11 }
 0x693   : > { %vm1088_vm9 = vmor %vm1086_vm8, %vm1087_vm7 }
 0x694   : > { %v1082_v15 = vmul.f32 %v2000_v11, %v1081_v12 }
 0x696   : > { %v1083_v16 = vmul.f32 0.5, %v1082_v15 }
 0x698   : > { %v1084_v20 = vsub.f32 1.5, %v1083_v16 }
 0x69a   : > { %v1085_v21 = vmul.f32 %v2000_v11, %v1084_v20 }
 0x69c   : > { %v1089_v23 = vsel %vm1088_vm9, %v2000_v11, %v1085_v21 }
 0x69d   : > { %v1090_v24 = vmul.f32 %v1089_v23, %v2484_v19  ;;  %v1116_v19 = vld [vmem:[%s2551_s9] sm:$0x3] }
 0x69e   : > { %v1118_v34 = vperm.slane %v1116_v19, 0  ;;  %v1119_v35 = vperm.slane %v1116_v19, 1 }
 0x69f   : > { %v1094_v27 = vmul.f32 %v1976_v22, %v1090_v24 }
 0x6a1   : > { %v1098_v28 = vadd.f32 %v1977_v25, %v1094_v27 }
 0x6a3   : > { %v1099_v29 = vpack.c.bf16 %v1098_v28, %v1098_v28 }
 0x6a5   : > { %1210 = vmatmul.bf16.vlgmr.msrb.gmra.mxu2 %v1099_v29  ;;  %1223 = vmatmul.bf16.vlgmr.msra.gmra.mxu3 %v1099_v29 }
 0x728   : > { %v1211_v36 = vpop.f32.mrf.mxu2  ;;  %v1224_v37 = vpop.f32.mrf.mxu3 }
 0x729   : > { %v1212_v26 = vadd.f32 %v1211_v36, %v1118_v34  ;;  %v1225_v38 = vadd.f32 %v1224_v37, %v1119_v35 }
 0x72b   : > { %v1228_v39 = vmax.f32 %v1212_v26, 0.0  ;;  %v1229_v40 = vmax.f32 %v1225_v38, 0.0 }
 0x72d   : > { %v1230_v41 = vpack.c.bf16 %v1228_v39, %v1228_v39  ;;  %v1231_v42 = vpack.c.bf16 %v1229_v40, %v1229_v40 }
 0x72f   : > { %1372 = vmatmul.bf16.vlgmr.msrb.gmra.mxu0 %v1230_v41  ;;  %1385 = vmatmul.bf16.vlgmr.msra.gmra.mxu1 %v1231_v42 }
 0x730   : > { %v1213_v43 = vpop.f32.mrf.mxu2  ;;  %v1226_v44 = vpop.f32.mrf.mxu3 }
 0x7ac   : > { %v1373_v46 = vpop.f32.mrf.mxu0  ;;  %v1386_v47 = vpop.f32.mrf.mxu1 }
 0x7ad   : > { %v1374_v48 = vadd.f32 %v1978_v45, %v1373_v46 }
 0x7af   : > { %v1387_v49 = vadd.f32 %v1386_v47, %v1374_v48 }
 0x7b1   : > { %v1390_v50 = vadd.f32 %v1387_v49, %v1098_v28 }
 0x7b3   : > { %1393 = vadd.xlane.f32.xlu1 %v1390_v50 }
 0x7b4   : > { %v1375_v51 = vpop.f32.mrf.mxu0  ;;  %v1388_v52 = vpop.f32.mrf.mxu1 }
 0x826   : > { %v1394_v53 = vpop.xlane.xlu1 %1393 }
 0x827   : > { %v1395_v54 = vmul.f32 %v1394_v53, %v2481_v17 }
 0x829   : > { %v1396_v56 = vsub.f32 %v1390_v50, %v1395_v54 }
 0x82b   : > { %v1397_v57 = vmul.f32 %v1396_v56, %v1396_v56 }
 0x82d   : > { %1398 = vadd.xlane.f32.xlu2 %v1397_v57 }
 0x8a0   : > { %v1399_v58 = vpop.xlane.xlu2 %1398 }
 0x8a1   : > { %v1400_v59 = vmul.f32 %v1399_v58, %v2481_v17 }
 0x8a3   : > { %v1401_v60 = vadd.f32 1e-05, %v1400_v59 }
 0x8a5   : > { %2001 = vrsqrt.f32 %v1401_v60  ;;  %vm1408_vm11 = vweird.f32 %v1401_v60 }
 0x8ab   : > { %v2002_v61 = vpop.eup %2001 }
 0x8ac   : > { %v1403_v63 = vmul.f32 %v2002_v61, %v1401_v60  ;;  %vm1409_vm10 = vweird.f32 %v2002_v61 }
 0x8ad   : > { %vm1410_vm12 = vmor %vm1408_vm11, %vm1409_vm10 }
 0x8ae   : > { %v1404_v0 = vmul.f32 %v2002_v61, %v1403_v63 }
 0x8b0   : > { %v1405_v1 = vmul.f32 0.5, %v1404_v0 }
 0x8b2   : > { %v1406_v2 = vsub.f32 1.5, %v1405_v1 }
 0x8b4   : > { %v1407_v3 = vmul.f32 %v2002_v61, %v1406_v2 }
 0x8b6   : > { %v1411_v17 = vsel %vm1410_vm12, %v2002_v61, %v1407_v3 }
 0x8b7   : > { %v1412_v5 = vmul.f32 %v1411_v17, %v1396_v56 }
 0x8b9   : > { %v1416_v7 = vmul.f32 %v1979_v4, %v1412_v5 }
 0x8bb   : > { %v1420_v8 = vadd.f32 %v1980_v6, %v1416_v7 }
 0x8bd   : > { %1421 = vst [vmem:[%s507_s25] sm:$0xff] %v1420_v8 }
 0x8be   : > { %2162 = shalt.err (!%p2159_p8)
}
 0x8bf   : > { %1900 = dma.vmem_to_hbm [thread:$0]  (%p2344_p5), %s1436_s0, 128, %s1438_s24, %s1423_s15  }
 0x8c0 PF: > { %s2590_s12 = sld [smem:[#allocation20_spill]] }
 0x8c1   : > { %s2591_s20 = sld [smem:[#allocation18_spill]] }
 0x8c6   : > { %p1927_p9 = scmp.ge.s32.totalorder %s2590_s12, 2 }
 0x8c7   : > { %s1449_s26 = sand.u32 1, %s2591_s20  }
 0x8c8   : > { %p1916_p10 = pnand %p1927_p9, %p2348_p6  ;;  %s1450_s28 = scalar_lea.sflag [#allocation6], %s1449_s26 }
 0x8ca   : > { %p1917_p11 = pneg %p1916_p10 }
 0x8cc   : > { %2194 = dma.done.wait (%p1917_p11), %s1450_s28, 128  }
 0x8cd   : > { %2196 = vsyncadd (%p1917_p11), %s1450_s28, 4294967168  ;;  %s2593_s20 = sld [smem:[#allocation21_spill]]  ;;  %s2596_s17 = smov %s2203_s18 }
 0x8ce   : > { %s2594_s29 = sld [smem:[#allocation19_spill]] }
 0x8cf   : > { %s2595_s19 = sld [smem:[#allocation22_spill]] }
 0x8d3   : > { %p35_p12 = scmp.ge.s32.totalorder %s2593_s20, 4  }
 0x8d4   : > { %s2597_s18 = smov %s2594_s29 }
 0x8d5   :  { %37 = sbr.rel (!%p35_p12) target bundleno = 16 (0x10), region = 124 }
 0x8da   :  { %1456 = vsyncpa [#allocation5], 1 }
 0x8db   :  { %1458 = vsyncpa [#allocation5 + $0x1], 1 }
 0x8dc   :  { %1459 = vsyncpa [#allocation8], 1 }
 0x8dd   :  { %1460 = vsyncpa [#allocation11], 1 }
 0x8de   :  { %1461 = vsyncpa [#allocation6], 1 }
 0x8df   :  { %1463 = vsyncpa [#allocation6 + $0x1], 1 }

</bundles_post_ra>
